<compile_context>
chip_gen: v6e
topology: v6e:2x2x1
jax: 0.10.0
libtpu: 0.0.40
codegen_flags: <defaults>
</compile_context>

<pallas_src>
import functools

import jax
import jax.numpy as jnp
from jax.experimental import pallas as pl
from jax.experimental.pallas import tpu as pltpu

LANE = 128


def _round_up(x, m):
    return (x + m - 1) // m * m


def _pad2(a, rows, cols):
    return jnp.pad(a, ((0, rows - a.shape[0]), (0, cols - a.shape[1])))


def _vmem_cap_bytes():
    """Physical VMEM capacity for the current generation (fallback: v7x's 64 MiB)."""
    try:
        info = pltpu.get_tpu_info()
        cap = getattr(info, "vmem_capacity_bytes", None)
        if cap:
            return int(cap)
    except Exception:
        pass
    return 64 * 2 ** 20


def _choose_node_tile(n_nodes, requested=512):
    """Largest lane-aligned tile <= requested, shrunk so the parallel row axis keeps
    >= 2 blocks when the graph allows it (v7x dual-TC)."""
    n128 = _round_up(max(n_nodes, 1), LANE)
    t = min(_round_up(requested, LANE), n128)
    while t > LANE and _round_up(n_nodes, t) // t < 2:
        t -= LANE
    return t


# ---------------------------------------------------------------------------
# Kernel body (shared by all five layers; layer 5 fuses the fc1 + tanh head)
# ---------------------------------------------------------------------------

def _make_gin_kernel(tk, h_resident, fused_head):
    def kernel(*refs):
        if fused_head:
            a_ref, h_ref, w_ref, b_ref, wf_ref, o_ref, of_ref, acc_ref = refs
        else:
            a_ref, h_ref, w_ref, b_ref, o_ref, acc_ref = refs
            wf_ref = of_ref = None

        k = pl.program_id(1)

        @pl.when(k == 0)
        def _():
            acc_ref[...] = jnp.zeros_like(acc_ref)

        if h_resident:
            start = pl.multiple_of(k * tk, tk)
            h_tile = h_ref[pl.ds(start, tk), :]           # bf16 (tk, Cin_p)
        else:
            h_tile = h_ref[...]                           # bf16 (tk, Cin_p)

        # acc += A_hat_tile @ h_tile   (int8 -> bf16 upcast on VPU, f32 MXU accumulate)
        acc_ref[...] += jnp.dot(
            a_ref[...].astype(jnp.bfloat16), h_tile,
            preferred_element_type=jnp.float32)

        @pl.when(k == pl.num_programs(1) - 1)
        def _():
            pre = jnp.dot(acc_ref[...].astype(jnp.bfloat16), w_ref[...],
                          preferred_element_type=jnp.float32) + b_ref[...]
            h_out = jnp.tanh(pre)                         # f32
            o_ref[...] = h_out.astype(o_ref.dtype)        # bf16 store
            if fused_head:
                of_ref[...] = jnp.tanh(
                    jnp.dot(h_out.astype(jnp.bfloat16), wf_ref[...],
                            preferred_element_type=jnp.float32)).astype(of_ref.dtype)

    return kernel


# ---------------------------------------------------------------------------
# Per-layer pallas_call wrapper
# ---------------------------------------------------------------------------

def _gin_conv(a_hat, h_in, w, b, *, wf=None, node_tile, vmem_cap):
    """One GINConv layer: (row_tiles, k_tiles) grid, streamed int8 A_hat, bf16 h."""
    n_pad = a_hat.shape[0]
    cp_in = h_in.shape[1]
    dim_p = w.shape[1]
    tm = tk = node_tile
    grid = (n_pad // tm, n_pad // tk)

    # Resident h when it fits a generation-aware budget (single DMA per layer).
    resident_budget = max(vmem_cap // 4, 8 * 2 ** 20)
    h_bytes = n_pad * cp_in * h_in.dtype.itemsize
    h_resident = h_bytes <= resident_budget

    # TODO(synk): on v5e, if xprof still shows exposed A_hat DMA at large tiles, add
    #             pipeline_mode=pl.Buffered(3) to a_spec.
    a_spec = pl.BlockSpec((tm, tk), lambda i, k: (i, k))
    if h_resident:
        h_spec = pl.BlockSpec((n_pad, cp_in), lambda i, k: (0, 0))
    else:
        h_spec = pl.BlockSpec((tk, cp_in), lambda i, k: (k, 0))
    w_spec = pl.BlockSpec((cp_in, dim_p), lambda i, k: (0, 0))
    b_spec = pl.BlockSpec((1, dim_p), lambda i, k: (0, 0))
    o_spec = pl.BlockSpec((tm, dim_p), lambda i, k: (i, 0))

    inputs = [a_hat, h_in, w, b]
    in_specs = [a_spec, h_spec, w_spec, b_spec]
    out_shape = [jax.ShapeDtypeStruct((n_pad, dim_p), jnp.bfloat16)]
    out_specs = [o_spec]

    if wf is not None:
        out_p = wf.shape[1]
        inputs.append(wf)
        in_specs.append(pl.BlockSpec((dim_p, out_p), lambda i, k: (0, 0)))
        out_shape.append(jax.ShapeDtypeStruct((n_pad, out_p), jnp.bfloat16))
        out_specs.append(pl.BlockSpec((tm, out_p), lambda i, k: (i, 0)))

    kernel = _make_gin_kernel(tk, h_resident, wf is not None)

    # --- VMEM budget (generation-aware cap) ---
    est = (2 * tm * tk * 1                                     # A_hat int8, double-buffered
           + (2 * n_pad * cp_in * 2 if h_resident
              else 2 * tk * cp_in * 2)                         # h bf16
           + 2 * tm * dim_p * 2                                # output bf16, double-buffered
           + tm * cp_in * 4                                    # f32 accumulator scratch
           + 2 * (cp_in * dim_p * 2 + dim_p * 4))              # weights + bias
    if wf is not None:
        est += 2 * (dim_p * wf.shape[1] * 2 + tm * wf.shape[1] * 2)
    budget_cap = max(24 * 2 ** 20, vmem_cap - 16 * 2 ** 20)    # leave headroom below physical
    vmem_limit = int(min(max(2 * est, 24 * 2 ** 20), budget_cap))

    outs = pl.pallas_call(
        kernel,
        out_shape=tuple(out_shape),
        grid=grid,
        in_specs=in_specs,
        out_specs=tuple(out_specs),
        scratch_shapes=[pltpu.VMEM((tm, cp_in), jnp.float32)],
        compiler_params=pltpu.CompilerParams(
            dimension_semantics=("parallel", "arbitrary"),
            vmem_limit_bytes=vmem_limit,
        ),
    )(*inputs)

    if wf is None:
        return outs[0]
    return outs


# ---------------------------------------------------------------------------
# Full forward
# ---------------------------------------------------------------------------

def gin_forward(X, X_importance, edge_index, params, *, dim, out_channels, node_tile=512):
    N, in_channels = X.shape
    cin_p = _round_up(in_channels, LANE)
    dim_p = _round_up(dim, LANE)
    out_p = _round_up(out_channels, LANE)

    tile = _choose_node_tile(N, node_tile)
    n_pad = _round_up(N, tile)
    vmem_cap = _vmem_cap_bytes()

    # --- bn_in batch statistics AND affine hoisted to the wrapper (O(N*Cin), tiny) ---
    ximp = X * X_importance
    mean = jnp.mean(ximp, axis=0, keepdims=True)
    var = jnp.mean((ximp - mean) ** 2, axis=0, keepdims=True)   # biased, as BatchNorm1d
    scale = params["bn_gamma"] * jax.lax.rsqrt(var + 1e-5)
    shift = params["bn_beta"] - mean * scale
    x_norm = ximp * scale + shift

    # --- dense A_hat = A + I built directly in int8 (values 0/1/2 exact); the self term
    #     is only added on real rows so padded rows stay all-zero. ---
    # TODO(synk): for very large, very sparse graphs replace the dense N^2 adjacency with a
    #             CSR/scalar-prefetch gather aggregation (O(E*dim) instead of O(N^2*dim)).
    src, dst = edge_index[0], edge_index[1]
    a_hat = jnp.zeros((n_pad, n_pad), jnp.int8).at[dst, src].add(jnp.int8(1))
    diag = jnp.arange(N, dtype=jnp.int32)
    a_hat = a_hat.at[diag, diag].add(jnp.int8(1))

    # --- zero-pad node and feature dims to lane-dense shapes; activations in bf16 ---
    x_p = _pad2(x_norm, n_pad, cin_p).astype(jnp.bfloat16)
    ws, bs = [], []
    for i in range(1, 6):
        c_in = cin_p if i == 1 else dim_p
        ws.append(_pad2(params[f"w{i}"], c_in, dim_p).astype(jnp.bfloat16))
        bs.append(_pad2(params[f"b{i}"], 1, dim_p))
    wf_p = _pad2(params["wf"], dim_p, out_p).astype(jnp.bfloat16)

    h = x_p
    hs = []
    for i in range(4):
        h = _gin_conv(a_hat, h, ws[i], bs[i], node_tile=tile, vmem_cap=vmem_cap)
        hs.append(h)
    h5, h6 = _gin_conv(a_hat, h, ws[4], bs[4], wf=wf_p, node_tile=tile, vmem_cap=vmem_cap)
    hs += [h5, h6]

    # cat(xs[1:], dim=-1): cheap unpad copy of lane-dense outputs; upcast to f32 for caller.
    cols = [dim] * 5 + [out_channels]
    return jnp.concatenate(
        [hi[:N, :c].astype(jnp.float32) for hi, c in zip(hs, cols)], axis=-1)


# ---------------------------------------------------------------------------
# Pure-JAX references (PyTorch semantics), with selectable MXU operand dtype
# ---------------------------------------------------------------------------

def _reference_forward(X, X_importance, edge_index, params, *, mxu_dtype=jnp.float32):
    N = X.shape[0]
    hp = jax.lax.Precision.HIGHEST
    src, dst = edge_index[0], edge_index[1]
    a_hat = (jnp.zeros((N, N), jnp.float32).at[dst, src].add(1.0)
             + jnp.eye(N, dtype=jnp.float32)).astype(mxu_dtype)

    ximp = X * X_importance
    mean = jnp.mean(ximp, axis=0, keepdims=True)
    var = jnp.mean((ximp - mean) ** 2, axis=0, keepdims=True)
    scale = params["bn_gamma"] * jax.lax.rsqrt(var + 1e-5)
    shift = params["bn_beta"] - mean * scale
    h = ximp * scale + shift

    xs = []
    for i in range(1, 6):
        w = params[f"w{i}"].astype(mxu_dtype)
        b = params[f"b{i}"]
        agg = jnp.dot(a_hat, h.astype(mxu_dtype),
                      preferred_element_type=jnp.float32, precision=hp)
        h = jnp.tanh(jnp.dot(agg.astype(mxu_dtype), w,
                             preferred_element_type=jnp.float32, precision=hp) + b)
        xs.append(h)
    xs.append(jnp.tanh(jnp.dot(h.astype(mxu_dtype), params["wf"].astype(mxu_dtype),
                               preferred_element_type=jnp.float32, precision=hp)))
    return jnp.concatenate(xs, axis=-1)


def make_params(key, in_channels, dim, out_channels):
    ks = jax.random.split(key, 11)
    s = 0.1
    return {
        "bn_gamma": jnp.ones((1, in_channels), jnp.float32),
        "bn_beta": jnp.zeros((1, in_channels), jnp.float32),
        # Linear weights stored pre-transposed: (C_in, C_out)
        "w1": s * jax.random.normal(ks[0], (in_channels, dim), jnp.float32),
        "b1": s * jax.random.normal(ks[1], (1, dim), jnp.float32),
        "w2": s * jax.random.normal(ks[2], (dim, dim), jnp.float32),
        "b2": s * jax.random.normal(ks[3], (1, dim), jnp.float32),
        "w3": s * jax.random.normal(ks[4], (dim, dim), jnp.float32),
        "b3": s * jax.random.normal(ks[5], (1, dim), jnp.float32),
        "w4": s * jax.random.normal(ks[6], (dim, dim), jnp.float32),
        "b4": s * jax.random.normal(ks[7], (1, dim), jnp.float32),
        "w5": s * jax.random.normal(ks[8], (dim, dim), jnp.float32),
        "b5": s * jax.random.normal(ks[9], (1, dim), jnp.float32),
        "wf": s * jax.random.normal(ks[10], (dim, out_channels), jnp.float32),  # fc1, no bias
    }


if __name__ == "__main__":
    key = jax.random.PRNGKey(0)
    N, in_channels, dim, out_channels = 256, 4, 32, 8

    k_x, k_imp, k_p = jax.random.split(key, 3)
    X = jax.random.normal(k_x, (N, in_channels), jnp.float32)
    X_importance = jax.random.uniform(k_imp, (N, 1), jnp.float32, 0.5, 1.5)

    # Deterministic graph: directed ring + reverse ring (every node has 2 in-edges).
    idx = jnp.arange(N, dtype=jnp.int32)
    src = jnp.concatenate([idx, (idx + 1) % N])
    dst = jnp.concatenate([(idx + 1) % N, idx])
    edge_index = jnp.stack([src, dst], axis=0)            # [2, E]

    params = make_params(k_p, in_channels, dim, out_channels)

    fwd = jax.jit(functools.partial(gin_forward, dim=dim, out_channels=out_channels))
    out = jax.block_until_ready(fwd(X, X_importance, edge_index, params))

    # Reference matching the kernel's documented numerics (bf16 MXU operands, f32 accum)
    ref_bf16 = _reference_forward(X, X_importance, edge_index, params, mxu_dtype=jnp.bfloat16)
    # Pure f32 reference (PyTorch semantics)
    ref_f32 = _reference_forward(X, X_importance, edge_index, params, mxu_dtype=jnp.float32)

    assert out.shape == (N, 5 * dim + out_channels), out.shape
    assert jnp.allclose(out, ref_bf16, atol=2.5e-2), float(jnp.max(jnp.abs(out - ref_bf16)))
    assert jnp.allclose(out, ref_f32, atol=7e-2), float(jnp.max(jnp.abs(out - ref_f32)))

    print("KERNEL_OK")
</pallas_src>

<mosaic_0001>
module attributes {stable_mosaic.version = 11 : i64} {
  func.func @kernel(%arg0: i32, %arg1: i32, %arg2: memref<128x128xi8, #tpu.memory_space<vmem>>, %arg3: memref<256x128xbf16, #tpu.memory_space<vmem>>, %arg4: memref<128x128xbf16, #tpu.memory_space<vmem>>, %arg5: memref<1x128xf32, #tpu.memory_space<vmem>>, %arg6: memref<128x128xbf16, #tpu.memory_space<vmem>>, %arg7: memref<128x128xbf16, #tpu.memory_space<vmem>>, %arg8: memref<128x128xbf16, #tpu.memory_space<vmem>>, %arg9: memref<128x128xf32, #tpu.memory_space<vmem>>) attributes {dimension_semantics = [#tpu.dimension_semantics<parallel>, #tpu.dimension_semantics<arbitrary>], iteration_bounds = array<i64: 2, 2>, scalar_prefetch = 0 : i64, scratch_operands = 1 : i64, tpu.core_type = #tpu.core_type<tc>, window_params = [{transform_indices = @transform_0, window_bounds = array<i64: 128, 128>}, {pipeline_mode = #tpu.pipeline_mode<synchronous>, transform_indices = @transform_1, window_bounds = array<i64: 256, 128>}, {pipeline_mode = #tpu.pipeline_mode<synchronous>, transform_indices = @transform_2, window_bounds = array<i64: 128, 128>}, {pipeline_mode = #tpu.pipeline_mode<synchronous>, transform_indices = @transform_3, window_bounds = array<i64: 1, 128>}, {pipeline_mode = #tpu.pipeline_mode<synchronous>, transform_indices = @transform_4, window_bounds = array<i64: 128, 128>}, {transform_indices = @transform_5, window_bounds = array<i64: 128, 128>}, {transform_indices = @transform_6, window_bounds = array<i64: 128, 128>}]} {
    %c0_i32 = arith.constant 0 : i32
    %0 = arith.cmpi eq, %arg1, %c0_i32 : i32
    %1 = arith.extui %0 : i1 to i32
    %c0_i32_0 = arith.constant 0 : i32
    %2 = arith.cmpi ne, %1, %c0_i32_0 : i32
    scf.if %2 {
      %cst_8 = arith.constant 0.000000e+00 : f32
      %16 = vector.broadcast %cst_8 : f32 to vector<128x128xf32>
      %c0_9 = arith.constant 0 : index
      %c0_10 = arith.constant 0 : index
      %17 = vector.load %arg9[%c0_9, %c0_10] : memref<128x128xf32, #tpu.memory_space<vmem>>, vector<128x128xf32>
      tpu.vector_store %arg9[%c0_9, %c0_10], %16 {strides = array<i32>} : memref<128x128xf32, #tpu.memory_space<vmem>>, vector<128x128xf32>,
    } else {
    }
    %c128_i32 = arith.constant 128 : i32
    %3 = arith.muli %arg1, %c128_i32 : i32
    %4 = tpu.assume_multiple %3, 128 : i32
    %5 = arith.index_cast %4 : i32 to index
    %c0 = arith.constant 0 : index
    %6 = vector.load %arg3[%5, %c0] : memref<256x128xbf16, #tpu.memory_space<vmem>>, vector<128x128xbf16>
    %c0_1 = arith.constant 0 : index
    %c0_2 = arith.constant 0 : index
    %7 = vector.load %arg9[%c0_1, %c0_2] : memref<128x128xf32, #tpu.memory_space<vmem>>, vector<128x128xf32>
    %c0_3 = arith.constant 0 : index
    %c0_4 = arith.constant 0 : index
    %8 = vector.load %arg2[%c0_3, %c0_4] : memref<128x128xi8, #tpu.memory_space<vmem>>, vector<128x128xi8>
    %9 = arith.sitofp %8 : vector<128x128xi8> to vector<128x128xbf16>
    %cst = arith.constant dense<0.000000e+00> : vector<128x128xf32>
    %10 = tpu.matmul %9, %6, %cst {dimension_numbers = #tpu.dot_dimension_numbers<[1], [0], [0], [1], [0, 0, 1, 1], [], []>} : vector<128x128xbf16>, vector<128x128xbf16>, vector<128x128xf32> -> vector<128x128xf32>
    %11 = arith.addf %7, %10 : vector<128x128xf32>
    %c0_5 = arith.constant 0 : index
    %c0_6 = arith.constant 0 : index
    %12 = vector.load %arg9[%c0_5, %c0_6] : memref<128x128xf32, #tpu.memory_space<vmem>>, vector<128x128xf32>
    tpu.vector_store %arg9[%c0_5, %c0_6], %11 {strides = array<i32>} : memref<128x128xf32, #tpu.memory_space<vmem>>, vector<128x128xf32>,
    %c1_i32 = arith.constant 1 : i32
    %13 = arith.cmpi eq, %arg1, %c1_i32 : i32
    %14 = arith.extui %13 : i1 to i32
    %c0_i32_7 = arith.constant 0 : i32
    %15 = arith.cmpi ne, %14, %c0_i32_7 : i32
    scf.if %15 {
      %c0_8 = arith.constant 0 : index
      %c0_9 = arith.constant 0 : index
      %16 = vector.load %arg9[%c0_8, %c0_9] : memref<128x128xf32, #tpu.memory_space<vmem>>, vector<128x128xf32>
      %17 = arith.truncf %16 : vector<128x128xf32> to vector<128x128xbf16>
      %c0_10 = arith.constant 0 : index
      %c0_11 = arith.constant 0 : index
      %18 = vector.load %arg4[%c0_10, %c0_11] : memref<128x128xbf16, #tpu.memory_space<vmem>>, vector<128x128xbf16>
      %cst_12 = arith.constant dense<0.000000e+00> : vector<128x128xf32>
      %19 = tpu.matmul %17, %18, %cst_12 {dimension_numbers = #tpu.dot_dimension_numbers<[1], [0], [0], [1], [0, 0, 1, 1], [], []>} : vector<128x128xbf16>, vector<128x128xbf16>, vector<128x128xf32> -> vector<128x128xf32>
      %c0_13 = arith.constant 0 : index
      %c0_14 = arith.constant 0 : index
      %20 = vector.load %arg5[%c0_13, %c0_14] : memref<1x128xf32, #tpu.memory_space<vmem>>, vector<1x128xf32>
      %21 = vector.broadcast %20 : vector<1x128xf32> to vector<128x128xf32>
      %22 = arith.addf %19, %21 : vector<128x128xf32>
      %23 = math.tanh %22 : vector<128x128xf32>
      %24 = arith.truncf %23 : vector<128x128xf32> to vector<128x128xbf16>
      %c0_15 = arith.constant 0 : index
      %c0_16 = arith.constant 0 : index
      %25 = vector.load %arg7[%c0_15, %c0_16] : memref<128x128xbf16, #tpu.memory_space<vmem>>, vector<128x128xbf16>
      tpu.vector_store %arg7[%c0_15, %c0_16], %24 {strides = array<i32>} : memref<128x128xbf16, #tpu.memory_space<vmem>>, vector<128x128xbf16>,
      %26 = arith.truncf %23 : vector<128x128xf32> to vector<128x128xbf16>
      %c0_17 = arith.constant 0 : index
      %c0_18 = arith.constant 0 : index
      %27 = vector.load %arg6[%c0_17, %c0_18] : memref<128x128xbf16, #tpu.memory_space<vmem>>, vector<128x128xbf16>
      %cst_19 = arith.constant dense<0.000000e+00> : vector<128x128xf32>
      %28 = tpu.matmul %26, %27, %cst_19 {dimension_numbers = #tpu.dot_dimension_numbers<[1], [0], [0], [1], [0, 0, 1, 1], [], []>} : vector<128x128xbf16>, vector<128x128xbf16>, vector<128x128xf32> -> vector<128x128xf32>
      %29 = math.tanh %28 : vector<128x128xf32>
      %30 = arith.truncf %29 : vector<128x128xf32> to vector<128x128xbf16>
      %c0_20 = arith.constant 0 : index
      %c0_21 = arith.constant 0 : index
      %31 = vector.load %arg8[%c0_20, %c0_21] : memref<128x128xbf16, #tpu.memory_space<vmem>>, vector<128x128xbf16>
      tpu.vector_store %arg8[%c0_20, %c0_21], %30 {strides = array<i32>} : memref<128x128xbf16, #tpu.memory_space<vmem>>, vector<128x128xbf16>,
    } else {
    }
    return
  }
  func.func @transform_0(%arg0: i32, %arg1: i32) -> (i32, i32) {
    %c0_i32 = arith.constant 0 : i32
    return %arg0, %arg1 : i32, i32
  }
  func.func @transform_1(%arg0: i32, %arg1: i32) -> (i32, i32) {
    %c0_i32 = arith.constant 0 : i32
    %c0_i32_0 = arith.constant 0 : i32
    %c0_i32_1 = arith.constant 0 : i32
    return %c0_i32, %c0_i32_0 : i32, i32
  }
  func.func @transform_2(%arg0: i32, %arg1: i32) -> (i32, i32) {
    %c0_i32 = arith.constant 0 : i32
    %c0_i32_0 = arith.constant 0 : i32
    %c0_i32_1 = arith.constant 0 : i32
    return %c0_i32, %c0_i32_0 : i32, i32
  }
  func.func @transform_3(%arg0: i32, %arg1: i32) -> (i32, i32) {
    %c0_i32 = arith.constant 0 : i32
    %c0_i32_0 = arith.constant 0 : i32
    %c0_i32_1 = arith.constant 0 : i32
    return %c0_i32, %c0_i32_0 : i32, i32
  }
  func.func @transform_4(%arg0: i32, %arg1: i32) -> (i32, i32) {
    %c0_i32 = arith.constant 0 : i32
    %c0_i32_0 = arith.constant 0 : i32
    %c0_i32_1 = arith.constant 0 : i32
    return %c0_i32, %c0_i32_0 : i32, i32
  }
  func.func @transform_5(%arg0: i32, %arg1: i32) -> (i32, i32) {
    %c0_i32 = arith.constant 0 : i32
    %c0_i32_0 = arith.constant 0 : i32
    return %arg0, %c0_i32 : i32, i32
  }
  func.func @transform_6(%arg0: i32, %arg1: i32) -> (i32, i32) {
    %c0_i32 = arith.constant 0 : i32
    %c0_i32_0 = arith.constant 0 : i32
    return %arg0, %c0_i32 : i32, i32
  }
}

module attributes {stable_mosaic.version = 11 : i64} {
  func.func @kernel(%arg0: i32, %arg1: i32, %arg2: memref<128x128xi8, #tpu.memory_space<vmem>>, %arg3: memref<256x128xbf16, #tpu.memory_space<vmem>>, %arg4: memref<128x128xbf16, #tpu.memory_space<vmem>>, %arg5: memref<1x128xf32, #tpu.memory_space<vmem>>, %arg6: memref<128x128xbf16, #tpu.memory_space<vmem>>, %arg7: memref<128x128xf32, #tpu.memory_space<vmem>>) attributes {dimension_semantics = [#tpu.dimension_semantics<parallel>, #tpu.dimension_semantics<arbitrary>], iteration_bounds = array<i64: 2, 2>, scalar_prefetch = 0 : i64, scratch_operands = 1 : i64, tpu.core_type = #tpu.core_type<tc>, window_params = [{transform_indices = @transform_0, window_bounds = array<i64: 128, 128>}, {pipeline_mode = #tpu.pipeline_mode<synchronous>, transform_indices = @transform_1, window_bounds = array<i64: 256, 128>}, {pipeline_mode = #tpu.pipeline_mode<synchronous>, transform_indices = @transform_2, window_bounds = array<i64: 128, 128>}, {pipeline_mode = #tpu.pipeline_mode<synchronous>, transform_indices = @transform_3, window_bounds = array<i64: 1, 128>}, {transform_indices = @transform_4, window_bounds = array<i64: 128, 128>}]} {
    %c0_i32 = arith.constant 0 : i32
    %0 = arith.cmpi eq, %arg1, %c0_i32 : i32
    %1 = arith.extui %0 : i1 to i32
    %c0_i32_0 = arith.constant 0 : i32
    %2 = arith.cmpi ne, %1, %c0_i32_0 : i32
    scf.if %2 {
      %cst_8 = arith.constant 0.000000e+00 : f32
      %16 = vector.broadcast %cst_8 : f32 to vector<128x128xf32>
      %c0_9 = arith.constant 0 : index
      %c0_10 = arith.constant 0 : index
      %17 = vector.load %arg7[%c0_9, %c0_10] : memref<128x128xf32, #tpu.memory_space<vmem>>, vector<128x128xf32>
      tpu.vector_store %arg7[%c0_9, %c0_10], %16 {strides = array<i32>} : memref<128x128xf32, #tpu.memory_space<vmem>>, vector<128x128xf32>,
    } else {
    }
    %c128_i32 = arith.constant 128 : i32
    %3 = arith.muli %arg1, %c128_i32 : i32
    %4 = tpu.assume_multiple %3, 128 : i32
    %5 = arith.index_cast %4 : i32 to index
    %c0 = arith.constant 0 : index
    %6 = vector.load %arg3[%5, %c0] : memref<256x128xbf16, #tpu.memory_space<vmem>>, vector<128x128xbf16>
    %c0_1 = arith.constant 0 : index
    %c0_2 = arith.constant 0 : index
    %7 = vector.load %arg7[%c0_1, %c0_2] : memref<128x128xf32, #tpu.memory_space<vmem>>, vector<128x128xf32>
    %c0_3 = arith.constant 0 : index
    %c0_4 = arith.constant 0 : index
    %8 = vector.load %arg2[%c0_3, %c0_4] : memref<128x128xi8, #tpu.memory_space<vmem>>, vector<128x128xi8>
    %9 = arith.sitofp %8 : vector<128x128xi8> to vector<128x128xbf16>
    %cst = arith.constant dense<0.000000e+00> : vector<128x128xf32>
    %10 = tpu.matmul %9, %6, %cst {dimension_numbers = #tpu.dot_dimension_numbers<[1], [0], [0], [1], [0, 0, 1, 1], [], []>} : vector<128x128xbf16>, vector<128x128xbf16>, vector<128x128xf32> -> vector<128x128xf32>
    %11 = arith.addf %7, %10 : vector<128x128xf32>
    %c0_5 = arith.constant 0 : index
    %c0_6 = arith.constant 0 : index
    %12 = vector.load %arg7[%c0_5, %c0_6] : memref<128x128xf32, #tpu.memory_space<vmem>>, vector<128x128xf32>
    tpu.vector_store %arg7[%c0_5, %c0_6], %11 {strides = array<i32>} : memref<128x128xf32, #tpu.memory_space<vmem>>, vector<128x128xf32>,
    %c1_i32 = arith.constant 1 : i32
    %13 = arith.cmpi eq, %arg1, %c1_i32 : i32
    %14 = arith.extui %13 : i1 to i32
    %c0_i32_7 = arith.constant 0 : i32
    %15 = arith.cmpi ne, %14, %c0_i32_7 : i32
    scf.if %15 {
      %c0_8 = arith.constant 0 : index
      %c0_9 = arith.constant 0 : index
      %16 = vector.load %arg7[%c0_8, %c0_9] : memref<128x128xf32, #tpu.memory_space<vmem>>, vector<128x128xf32>
      %17 = arith.truncf %16 : vector<128x128xf32> to vector<128x128xbf16>
      %c0_10 = arith.constant 0 : index
      %c0_11 = arith.constant 0 : index
      %18 = vector.load %arg4[%c0_10, %c0_11] : memref<128x128xbf16, #tpu.memory_space<vmem>>, vector<128x128xbf16>
      %cst_12 = arith.constant dense<0.000000e+00> : vector<128x128xf32>
      %19 = tpu.matmul %17, %18, %cst_12 {dimension_numbers = #tpu.dot_dimension_numbers<[1], [0], [0], [1], [0, 0, 1, 1], [], []>} : vector<128x128xbf16>, vector<128x128xbf16>, vector<128x128xf32> -> vector<128x128xf32>
      %c0_13 = arith.constant 0 : index
      %c0_14 = arith.constant 0 : index
      %20 = vector.load %arg5[%c0_13, %c0_14] : memref<1x128xf32, #tpu.memory_space<vmem>>, vector<1x128xf32>
      %21 = vector.broadcast %20 : vector<1x128xf32> to vector<128x128xf32>
      %22 = arith.addf %19, %21 : vector<128x128xf32>
      %23 = math.tanh %22 : vector<128x128xf32>
      %24 = arith.truncf %23 : vector<128x128xf32> to vector<128x128xbf16>
      %c0_15 = arith.constant 0 : index
      %c0_16 = arith.constant 0 : index
      %25 = vector.load %arg6[%c0_15, %c0_16] : memref<128x128xbf16, #tpu.memory_space<vmem>>, vector<128x128xbf16>
      tpu.vector_store %arg6[%c0_15, %c0_16], %24 {strides = array<i32>} : memref<128x128xbf16, #tpu.memory_space<vmem>>, vector<128x128xbf16>,
    } else {
    }
    return
  }
  func.func @transform_0(%arg0: i32, %arg1: i32) -> (i32, i32) {
    %c0_i32 = arith.constant 0 : i32
    return %arg0, %arg1 : i32, i32
  }
  func.func @transform_1(%arg0: i32, %arg1: i32) -> (i32, i32) {
    %c0_i32 = arith.constant 0 : i32
    %c0_i32_0 = arith.constant 0 : i32
    %c0_i32_1 = arith.constant 0 : i32
    return %c0_i32, %c0_i32_0 : i32, i32
  }
  func.func @transform_2(%arg0: i32, %arg1: i32) -> (i32, i32) {
    %c0_i32 = arith.constant 0 : i32
    %c0_i32_0 = arith.constant 0 : i32
    %c0_i32_1 = arith.constant 0 : i32
    return %c0_i32, %c0_i32_0 : i32, i32
  }
  func.func @transform_3(%arg0: i32, %arg1: i32) -> (i32, i32) {
    %c0_i32 = arith.constant 0 : i32
    %c0_i32_0 = arith.constant 0 : i32
    %c0_i32_1 = arith.constant 0 : i32
    return %c0_i32, %c0_i32_0 : i32, i32
  }
  func.func @transform_4(%arg0: i32, %arg1: i32) -> (i32, i32) {
    %c0_i32 = arith.constant 0 : i32
    %c0_i32_0 = arith.constant 0 : i32
    return %arg0, %c0_i32 : i32, i32
  }
}

</mosaic_0001>

<bundles_post_ra>
// kernel: gin_forward.5
= control target key start
LH: loop header
LB: loop body
LE: loop exit
PB: predicated region body
PF: predicated region fallthrough
CT: control target
= control target key end

     0   :  { %s1443_s15 = smov 0   ;;  %s1445_s16 = smov 0   ;;  %s1620_s0 = inlined_call_operand.vmem [shape: s8[256,256], index: 0, kind: input, shape index: {}]   ;;  %s1621_s1 = inlined_call_operand.vmem [shape: bf16[256,128], index: 1, kind: input, shape index: {}]   ;;  %s1622_s2 = inlined_call_operand.vmem [shape: bf16[128,128], index: 2, kind: input, shape index: {}]   ;;  %s1623_s3 = inlined_call_operand.vmem [shape: f32[1,128], index: 3, kind: input, shape index: {}]   ;;  %s1624_s4 = inlined_call_operand.vmem [shape: bf16[256,128], index: 4, kind: output, shape index: {}]  }
   0x1   :  { %s1447_s17 = smov 0   ;;  %s1449_s18 = smov 0  }
   0x2   :  { %s1451_s19 = smov 0   ;;  %s1453_s20 = smov 0  }
   0x3   :  { %s1455_s21 = smov 0  }
   0x4 LB: > { %s23_s22 = sadd.s32 1, %s1407_s19  ;;  %s26_s23 = sadd.s32 1, %s1411_s20  ;;  %s1415_s21 = sphi %s1455_s21, %s14_s21   ;;  %s1411_s20 = sphi %s1453_s20, %s1630_s20   ;;  %s1407_s19 = sphi %s1451_s19, %s1629_s19   ;;  %s1403_s18 = sphi %s1449_s18, %s1628_s18   ;;  %s1399_s17 = sphi %s1447_s17, %s1627_s17   ;;  %s1395_s16 = sphi %s1445_s16, %s1626_s16   ;;  %s1391_s15 = sphi %s1443_s15, %s1625_s15  }
   0x5   : > { %p24_p0 = scmp.ge.s32.totalorder %s23_s22, 2  ;;  %p42_p1 = scmp.ne.s32.totalorder %s1395_s16, %s1391_s15 }
   0x6   : > { %p43_p2 = scmp.eq.s32.totalorder %s1415_s21, 0  ;;  %s35_s27 = sadd.s32 1, %s1395_s16 }
   0x7   : > { %s1632_s22 = smov (%p24_p0, %s23_s22), 0  ;;  %s1634_s23 = smov (!%p24_p0, %s26_s23), %s1411_s20 }
   0x8   : > { %p44_p3 = por %p43_p2, %p42_p1  ;;  %p28_p4 = scmp.ge.s32.totalorder %s1634_s23, 2 }
   0x9   : > { %s31_s24 = ssub.s32 %s1407_s19, %s1632_s22  ;;  %p1008_p6 = scmp.ge.s32.totalorder %s1415_s21, 4 }
   0xa   : > { %s1636_s23 = smov (%p28_p4, %s1634_s23), 0 }
   0xb   : > { %s30_s25 = ssub.s32 %s1411_s20, %s1636_s23  ;;  %166 = sbr.rel (%p1008_p6) target bundleno = 32 (0x20), region = 28 }
   0xc   : > { %s32_s26 = sor.u32 %s31_s24, %s30_s25 }
   0xd   : > { %p33_p5 = scmp.eq.s32.totalorder %s32_s26, 0 }
   0xf   : > { %s1494_s28 = scalar_select %p33_p5, %s1395_s16, %s35_s27  }
  0x10   : > { %169 = sbr.rel (!%p44_p3) target bundleno = 32 (0x20), region = 32  ;;  %s171_s29 = sand.u32 (%p44_p3), 1, %s1395_s16  }
  0x11   : > { %s1064_s30 = sshll.u32 (%p44_p3), %s1411_s20, 5  ;;  %s1009_s5 = sshll.u32 (%p44_p3), %s171_s29, 5 }
  0x12   : > { %s176_s6 = sadd.s32 (%p44_p3), %s1407_s19, %s1064_s30  ;;  %s173_s11 = scalar_lea.vmem (%p44_p3), [#allocation3], %s1009_s5 }
  0x13   : > { %s1012_s7 = sshll.u32 (%p44_p3), %s176_s6, 1 }
  0x14   : > { %s1503_s10 = scalar_lea.vmem (%p44_p3), %s1620_s0, %s1012_s7 }
  0x15   : > { %v195_v0 = vld [vmem:[%s1503_s10] sm:$0x3]  ;;  %v197_v1 = vld [vmem:[%s1503_s10 + $0x4] sm:$0x3]  ;;  %v199_v2 = vld [vmem:[%s1503_s10 + $0x8] sm:$0x3] }
  0x16   : > { %196 = vst [vmem:[%s173_s11] sm:$0x3] %v195_v0  ;;  %198 = vst [vmem:[%s173_s11 + $0x2] sm:$0x3] %v197_v1  ;;  %v201_v3 = vld [vmem:[%s1503_s10 + $0xc] sm:$0x3] }
  0x17   : > { %200 = vst [vmem:[%s173_s11 + $0x4] sm:$0x3] %v199_v2  ;;  %v203_v4 = vld [vmem:[%s1503_s10 + $0x10] sm:$0x3]  ;;  %v205_v5 = vld [vmem:[%s1503_s10 + $0x14] sm:$0x3] }
  0x18   : > { %202 = vst [vmem:[%s173_s11 + $0x6] sm:$0x3] %v201_v3  ;;  %204 = vst [vmem:[%s173_s11 + $0x8] sm:$0x3] %v203_v4  ;;  %v207_v6 = vld [vmem:[%s1503_s10 + $0x18] sm:$0x3] }
  0x19   : > { %206 = vst [vmem:[%s173_s11 + $0xa] sm:$0x3] %v205_v5  ;;  %v209_v7 = vld [vmem:[%s1503_s10 + $0x1c] sm:$0x3]  ;;  %v211_v8 = vld [vmem:[%s1503_s10 + $0x20] sm:$0x3] }
  0x1a   : > { %208 = vst [vmem:[%s173_s11 + $0xc] sm:$0x3] %v207_v6  ;;  %210 = vst [vmem:[%s173_s11 + $0xe] sm:$0x3] %v209_v7  ;;  %v213_v9 = vld [vmem:[%s1503_s10 + $0x24] sm:$0x3] }
  0x1b   : > { %212 = vst [vmem:[%s173_s11 + $0x10] sm:$0x3] %v211_v8  ;;  %v215_v10 = vld [vmem:[%s1503_s10 + $0x28] sm:$0x3]  ;;  %v217_v11 = vld [vmem:[%s1503_s10 + $0x2c] sm:$0x3] }
  0x1c   : > { %214 = vst [vmem:[%s173_s11 + $0x12] sm:$0x3] %v213_v9  ;;  %216 = vst [vmem:[%s173_s11 + $0x14] sm:$0x3] %v215_v10  ;;  %v219_v12 = vld [vmem:[%s1503_s10 + $0x30] sm:$0x3] }
  0x1d   : > { %218 = vst [vmem:[%s173_s11 + $0x16] sm:$0x3] %v217_v11  ;;  %v221_v13 = vld [vmem:[%s1503_s10 + $0x34] sm:$0x3]  ;;  %v223_v14 = vld [vmem:[%s1503_s10 + $0x38] sm:$0x3] }
  0x1e   : > { %220 = vst [vmem:[%s173_s11 + $0x18] sm:$0x3] %v219_v12  ;;  %222 = vst [vmem:[%s173_s11 + $0x1a] sm:$0x3] %v221_v13  ;;  %v225_v15 = vld [vmem:[%s1503_s10 + $0x3c] sm:$0x3] }
  0x1f   : > { %224 = vst [vmem:[%s173_s11 + $0x1c] sm:$0x3] %v223_v14  ;;  %226 = vst [vmem:[%s173_s11 + $0x1e] sm:$0x3] %v225_v15 }
  0x20 PF: > { %p1013_p7 = scmp.ge.s32.totalorder %s1415_s21, 1  ;;  %p281_p8 = scmp.lt.s32.totalorder %s1415_s21, 5 }
  0x22   : > { %p282_p9 = pnand %p1013_p7, %p281_p8 }
  0x23   : > { %s288_s12 = sand.u32 (!%p282_p9), 1, %s1391_s15   ;;  %s1015_s13 = sshll.u32 (!%p282_p9), %s1403_s18, 4 }
  0x24   : > { %285 = sbr.rel (%p282_p9) target bundleno = 563 (0x233), region = 73  ;;  %s1014_s14 = sshll.u32 (!%p282_p9), %s288_s12, 5 }
  0x25   : > { %p315_p10 = scmp.lt.s32.totalorder (!%p282_p9), %s1015_s13, 31  ;;  %s1530_s29 = scalar_lea.vmem (!%p282_p9), [#allocation3], %s1014_s14 }
  0x26   : > { %p1017_p11 = scmp.ne.s32.totalorder (!%p282_p9), %s1399_s17, 0 }
  0x29   : > { %s1638_s13 = smov (!%p315_p10, %s1015_s13), 31  ;;  %324 = sbr.rel (%p1017_p11) target bundleno = 55 (0x37), region = 81 }
  0x2a   : > { %s1016_s24 = sshll.u32 %s1638_s13, 2 }
  0x2b   : > { %s1528_s27 = scalar_lea.vmem %s1624_s4, %s1016_s24 }
  0x2e   : > { %v1417_v16 = vmov 0.0  }
  0x2f   : > { %325 = vst [vmem:[#allocation2 + $0x30] sm:$0xff] %v1417_v16  ;;  %326 = vst [vmem:[#allocation2] sm:$0xff] %v1417_v16 }
  0x30   : > { %327 = vst [vmem:[#allocation2 + $0x58] sm:$0xff] %v1417_v16  ;;  %328 = vst [vmem:[#allocation2 + $0x18] sm:$0xff] %v1417_v16 }
  0x31   : > { %329 = vst [vmem:[#allocation2 + $0x50] sm:$0xff] %v1417_v16  ;;  %330 = vst [vmem:[#allocation2 + $0x68] sm:$0xff] %v1417_v16 }
  0x32   : > { %331 = vst [vmem:[#allocation2 + $0x8] sm:$0xff] %v1417_v16  ;;  %332 = vst [vmem:[#allocation2 + $0x48] sm:$0xff] %v1417_v16 }
  0x33   : > { %333 = vst [vmem:[#allocation2 + $0x40] sm:$0xff] %v1417_v16  ;;  %334 = vst [vmem:[#allocation2 + $0x20] sm:$0xff] %v1417_v16 }
  0x34   : > { %335 = vst [vmem:[#allocation2 + $0x10] sm:$0xff] %v1417_v16  ;;  %336 = vst [vmem:[#allocation2 + $0x38] sm:$0xff] %v1417_v16 }
  0x35   : > { %337 = vst [vmem:[#allocation2 + $0x60] sm:$0xff] %v1417_v16  ;;  %338 = vst [vmem:[#allocation2 + $0x70] sm:$0xff] %v1417_v16 }
  0x36   : > { %339 = vst [vmem:[#allocation2 + $0x78] sm:$0xff] %v1417_v16  ;;  %340 = vst [vmem:[#allocation2 + $0x28] sm:$0xff] %v1417_v16 }
  0x37 PF: > { %s1018_s15 = sshll.u32 %s1399_s17, 7  ;;  %v378_v17 = vld [vmem:[%s1530_s29] sm:$0x3]  ;;  %v379_v18 = vld [vmem:[%s1530_s29 + $0x2] sm:$0x3]  ;;  %v364_v1 = vld [vmem:[#allocation2 + $0x58] sm:$0xff] }
  0x38   : > { %s342_s18 = sshra.s32 %s1018_s15, 3  ;;  %v394_v19 = vunpack.c.l.s8.bf16 %v378_v17  ;;  %v395_v20 = vunpack.c.l.s8.bf16 %v379_v18  ;;  %v386_v21 = vld [vmem:[%s1530_s29 + $0x10] sm:$0x3]  ;;  %v387_v22 = vld [vmem:[%s1530_s29 + $0x12] sm:$0x3]  ;;  %v365_v11 = vld [vmem:[#allocation2 + $0x18] sm:$0xff] }
  0x39   : > { %s1019_s30 = sshll.u32 %s342_s18, 2  ;;  %v402_v23 = vunpack.c.l.s8.bf16 %v386_v21  ;;  %v403_v24 = vunpack.c.l.s8.bf16 %v387_v22  ;;  %v380_v34 = vld [vmem:[%s1530_s29 + $0x4] sm:$0x3]  ;;  %v381_v35 = vld [vmem:[%s1530_s29 + $0x6] sm:$0x3]  ;;  %v362_v5 = vld [vmem:[#allocation2 + $0x30] sm:$0xff] }
  0x3a   : > { %s1541_s7 = scalar_lea.vmem %s1621_s1, %s1019_s30  ;;  %v1020_v25 = vcombine.low %v394_v19, %v395_v20  ;;  %v388_v36 = vld [vmem:[%s1530_s29 + $0x14] sm:$0x3]  ;;  %v389_v38 = vld [vmem:[%s1530_s29 + $0x16] sm:$0x3]  ;;  %v382_v39 = vld [vmem:[%s1530_s29 + $0x8] sm:$0x3]  ;;  %v396_v43 = vunpack.c.l.s8.bf16 %v380_v34  ;;  %v397_v44 = vunpack.c.l.s8.bf16 %v381_v35 }
  0x3b   : > { %v1313_v26 = vld [vmem:[%s1541_s7 + $0x38] sm:$0xff]   ;;  %v1314_v27 = vld [vmem:[%s1541_s7 + $0x30] sm:$0xff]   ;;  %v1024_v28 = vcombine.low %v402_v23, %v403_v24  ;;  %v1315_v29 = vld [vmem:[%s1541_s7 + $0x28] sm:$0xff]   ;;  %v404_v45 = vunpack.c.l.s8.bf16 %v388_v36  ;;  %v405_v46 = vunpack.c.l.s8.bf16 %v389_v38  ;;  %v398_v47 = vunpack.c.l.s8.bf16 %v382_v39  ;;  %p1036_p12 = scmp.ne.s32.totalorder %s1399_s17, 1 }
  0x3c   : > { %1176 = vmatprep.mubr.bf16.mxu0 %v1020_v25  ;;  %1160 = vmatprep.subr.bf16.mxu0 %v1313_v26  ;;  %v1316_v30 = vld [vmem:[%s1541_s7 + $0x20] sm:$0xff]   ;;  %v1317_v31 = vld [vmem:[%s1541_s7 + $0x18] sm:$0xff]   ;;  %v1318_v32 = vld [vmem:[%s1541_s7 + $0x10] sm:$0xff]   ;;  %v1021_v51 = vcombine.low %v396_v43, %v397_v44 }
  0x3d   : > { %1224 = vmatprep.subr.bf16.mxu1 %v1313_v26  ;;  %1161 = vmatpush3.bf16.msra.mxu0 %v1313_v26  ;;  %v1319_v33 = vld [vmem:[%s1541_s7 + $0x8] sm:$0xff]   ;;  %v1320_v37 = vld [vmem:[%s1541_s7] sm:$0xff]   ;;  %v390_v41 = vld [vmem:[%s1530_s29 + $0x18] sm:$0x3]  ;;  %v1025_v52 = vcombine.low %v404_v45, %v405_v46 }
  0x3e   : > { %1232 = vmatpush3.bf16.msra.mxu1 %v1313_v26  ;;  %1162 = vmatprep.subr.bf16.mxu0 %v1314_v27  ;;  %v383_v40 = vld [vmem:[%s1530_s29 + $0xa] sm:$0x3]  ;;  %v391_v42 = vld [vmem:[%s1530_s29 + $0x1a] sm:$0x3]  ;;  %v406_v49 = vunpack.c.l.s8.bf16 %v390_v41  ;;  %v384_v53 = vld [vmem:[%s1530_s29 + $0xc] sm:$0x3] }
  0x3f   : > { %1225 = vmatprep.subr.bf16.mxu1 %v1314_v27  ;;  %1184 = vmatprep.mubr.bf16.mxu1 %v1024_v28  ;;  %v399_v48 = vunpack.c.l.s8.bf16 %v383_v40  ;;  %v407_v50 = vunpack.c.l.s8.bf16 %v391_v42  ;;  %v385_v56 = vld [vmem:[%s1530_s29 + $0xe] sm:$0x3]  ;;  %v392_v57 = vld [vmem:[%s1530_s29 + $0x1c] sm:$0x3]  ;;  %v393_v58 = vld [vmem:[%s1530_s29 + $0x1e] sm:$0x3]  ;;  %v400_v59 = vunpack.c.l.s8.bf16 %v384_v53 }
  0x40   : > { %v401_v60 = vunpack.c.l.s8.bf16 %v385_v56  ;;  %v408_v61 = vunpack.c.l.s8.bf16 %v392_v57  ;;  %v409_v62 = vunpack.c.l.s8.bf16 %v393_v58  ;;  %v372_v2 = vld [vmem:[#allocation2 + $0x10] sm:$0xff]  ;;  %v370_v6 = vld [vmem:[#allocation2 + $0x40] sm:$0xff]  ;;  %v373_v12 = vld [vmem:[#allocation2 + $0x38] sm:$0xff] }
  0x41   : > { %1163 = vmatpush3.bf16.msra.mxu0 %v1314_v27  ;;  %v1022_v54 = vcombine.low %v398_v47, %v399_v48  ;;  %v1026_v55 = vcombine.low %v406_v49, %v407_v50  ;;  %v363_v17 = vld [vmem:[#allocation2] sm:$0xff]  ;;  %v368_v23 = vld [vmem:[#allocation2 + $0x8] sm:$0xff]  ;;  %v376_v24 = vld [vmem:[#allocation2 + $0x78] sm:$0xff] }
  0x42   : > { %1233 = vmatpush3.bf16.msra.mxu1 %v1314_v27  ;;  %1164 = vmatprep.subr.bf16.mxu0 %v1315_v29  ;;  %v1023_v63 = vcombine.low %v400_v59, %v401_v60  ;;  %v1027_v0 = vcombine.low %v408_v61, %v409_v62  ;;  %v371_v18 = vld [vmem:[#allocation2 + $0x20] sm:$0xff]  ;;  %v369_v35 = vld [vmem:[#allocation2 + $0x48] sm:$0xff]  ;;  %v375_v42 = vld [vmem:[#allocation2 + $0x70] sm:$0xff] }
  0x43   : > { %1226 = vmatprep.subr.bf16.mxu1 %v1315_v29  ;;  %v377_v36 = vld [vmem:[#allocation2 + $0x28] sm:$0xff] }
  0x44   : > { %v367_v41 = vld [vmem:[#allocation2 + $0x68] sm:$0xff] }
  0x45   : > { %1165 = vmatpush3.bf16.msra.mxu0 %v1315_v29 }
  0x46   : > { %1234 = vmatpush3.bf16.msra.mxu1 %v1315_v29  ;;  %1166 = vmatprep.subr.bf16.mxu0 %v1316_v30  ;;  %v366_v29 = vld [vmem:[#allocation2 + $0x50] sm:$0xff] }
  0x47   : > { %1227 = vmatprep.subr.bf16.mxu1 %v1316_v30 }
  0x49   : > { %1167 = vmatpush3.bf16.msra.mxu0 %v1316_v30 }
  0x4a   : > { %1235 = vmatpush3.bf16.msra.mxu1 %v1316_v30  ;;  %1168 = vmatprep.subr.bf16.mxu0 %v1317_v31  ;;  %v374_v30 = vld [vmem:[#allocation2 + $0x60] sm:$0xff] }
  0x4b   : > { %1228 = vmatprep.subr.bf16.mxu1 %v1317_v31 }
  0x4d   : > { %1169 = vmatpush3.bf16.msra.mxu0 %v1317_v31 }
  0x4e   : > { %1236 = vmatpush3.bf16.msra.mxu1 %v1317_v31  ;;  %1170 = vmatprep.subr.bf16.mxu0 %v1318_v32 }
  0x4f   : > { %1229 = vmatprep.subr.bf16.mxu1 %v1318_v32 }
  0x51   : > { %1171 = vmatpush3.bf16.msra.mxu0 %v1318_v32 }
  0x52   : > { %1237 = vmatpush3.bf16.msra.mxu1 %v1318_v32  ;;  %1172 = vmatprep.subr.bf16.mxu0 %v1319_v33 }
  0x53   : > { %1230 = vmatprep.subr.bf16.mxu1 %v1319_v33 }
  0x55   : > { %1173 = vmatpush3.bf16.msra.mxu0 %v1319_v33 }
  0x56   : > { %1238 = vmatpush3.bf16.msra.mxu1 %v1319_v33  ;;  %1174 = vmatprep.subr.bf16.mxu0 %v1320_v37 }
  0x57   : > { %1231 = vmatprep.subr.bf16.mxu1 %v1320_v37 }
  0x59   : > { %1175 = vmatpush3.bf16.msra.mxu0 %v1320_v37 }
  0x5a   : > { %1239 = vmatpush3.bf16.msra.mxu1 %v1320_v37 }
  0x5c   : > { %1177 = vmatmul.mubr.bf16.vlgmr.msra.gmra.mxu0 %v1021_v51 }
  0x5d   : > { %1185 = vmatmul.mubr.bf16.vlgmr.msra.gmra.mxu1 %v1025_v52  ;;  %1180 = vmatprep.mubr.bf16.mxu0 %v1022_v54 }
  0x5e   : > { %1188 = vmatprep.mubr.bf16.mxu1 %v1026_v55 }
  0x64   : > { %1181 = vmatmul.mubr.bf16.gmra.mxu0 %v1023_v63 }
  0x65   : > { %1189 = vmatmul.mubr.bf16.gmra.mxu1 %v1027_v0 }
 0x11c   : > { %v1178_v3 = vpop.f32.mrf.mxu0 }
 0x11d   : > { %v1186_v4 = vpop.f32.mrf.mxu1  ;;  %v605_v7 = vadd.f32 %v1178_v3, %v364_v1 }
 0x11e   : > { %v613_v8 = vadd.f32 %v1186_v4, %v372_v2  ;;  %v540_v9 = vpop.f32.mrf.mxu0 }
 0x11f   : > { %v572_v10 = vpop.f32.mrf.mxu1  ;;  %621 = vst [vmem:[#allocation2 + $0x58] sm:$0xff] %v605_v7  ;;  %v603_v13 = vadd.f32 %v540_v9, %v362_v5 }
 0x120   : > { %629 = vst [vmem:[#allocation2 + $0x10] sm:$0xff] %v613_v8  ;;  %v611_v14 = vadd.f32 %v572_v10, %v370_v6  ;;  %v1179_v15 = vpop.f32.mrf.mxu0 }
 0x121   : > { %v1187_v16 = vpop.f32.mrf.mxu1  ;;  %619 = vst [vmem:[#allocation2 + $0x30] sm:$0xff] %v603_v13  ;;  %v606_v19 = vadd.f32 %v1179_v15, %v365_v11 }
 0x122   : > { %627 = vst [vmem:[#allocation2 + $0x40] sm:$0xff] %v611_v14  ;;  %v614_v20 = vadd.f32 %v1187_v16, %v373_v12  ;;  %v543_v21 = vpop.f32.mrf.mxu0 }
 0x123   : > { %v575_v22 = vpop.f32.mrf.mxu1  ;;  %622 = vst [vmem:[#allocation2 + $0x18] sm:$0xff] %v606_v19  ;;  %v604_v25 = vadd.f32 %v543_v21, %v363_v17 }
 0x124   : > { %630 = vst [vmem:[#allocation2 + $0x38] sm:$0xff] %v614_v20  ;;  %v612_v26 = vadd.f32 %v575_v22, %v371_v18  ;;  %v1182_v27 = vpop.f32.mrf.mxu0 }
 0x125   : > { %v1190_v28 = vpop.f32.mrf.mxu1  ;;  %620 = vst [vmem:[#allocation2] sm:$0xff] %v604_v25  ;;  %v609_v31 = vadd.f32 %v1182_v27, %v368_v23 }
 0x126   : > { %628 = vst [vmem:[#allocation2 + $0x20] sm:$0xff] %v612_v26  ;;  %v617_v32 = vadd.f32 %v1190_v28, %v376_v24  ;;  %v556_v33 = vpop.f32.mrf.mxu0 }
 0x127   : > { %v588_v34 = vpop.f32.mrf.mxu1  ;;  %625 = vst [vmem:[#allocation2 + $0x8] sm:$0xff] %v609_v31  ;;  %v607_v37 = vadd.f32 %v556_v33, %v366_v29 }
 0x128   : > { %633 = vst [vmem:[#allocation2 + $0x78] sm:$0xff] %v617_v32  ;;  %v615_v38 = vadd.f32 %v588_v34, %v374_v30  ;;  %v1183_v39 = vpop.f32.mrf.mxu0 }
 0x129   : > { %v1191_v40 = vpop.f32.mrf.mxu1  ;;  %623 = vst [vmem:[#allocation2 + $0x50] sm:$0xff] %v607_v37  ;;  %v610_v43 = vadd.f32 %v1183_v39, %v369_v35 }
 0x12a   : > { %631 = vst [vmem:[#allocation2 + $0x60] sm:$0xff] %v615_v38  ;;  %v618_v44 = vadd.f32 %v1191_v40, %v377_v36  ;;  %v559_v45 = vpop.f32.mrf.mxu0  ;;  %638 = sbr.rel (%p1036_p12) target bundleno = 563 (0x233), region = 85 }
 0x12b   : > { %v591_v46 = vpop.f32.mrf.mxu1  ;;  %626 = vst [vmem:[#allocation2 + $0x48] sm:$0xff] %v610_v43  ;;  %v608_v47 = vadd.f32 %v559_v45, %v367_v41 }
 0x12c   : > { %634 = vst [vmem:[#allocation2 + $0x28] sm:$0xff] %v618_v44  ;;  %v616_v48 = vadd.f32 %v591_v46, %v375_v42 }
 0x12d   : > { %624 = vst [vmem:[#allocation2 + $0x68] sm:$0xff] %v608_v47 }
 0x12e   : > { %632 = vst [vmem:[#allocation2 + $0x70] sm:$0xff] %v616_v48 }
 0x12f   : > { %v1321_v49 = vld [vmem:[%s1622_s2 + $0x38] sm:$0xff]   ;;  %v1322_v50 = vld [vmem:[%s1622_s2 + $0x30] sm:$0xff]   ;;  %v1323_v51 = vld [vmem:[%s1622_s2 + $0x28] sm:$0xff]  }
 0x130   : > { %1192 = vmatprep.subr.bf16.mxu0 %v1321_v49  ;;  %1240 = vmatprep.subr.bf16.mxu1 %v1321_v49  ;;  %v1324_v52 = vld [vmem:[%s1622_s2 + $0x20] sm:$0xff]   ;;  %v639_v53 = vld [vmem:[#allocation2 + $0x30] sm:$0xff]  ;;  %v1325_v59 = vld [vmem:[%s1622_s2 + $0x18] sm:$0xff]  }
 0x131   : > { %1193 = vmatpush3.bf16.msra.mxu0 %v1321_v49  ;;  %1248 = vmatpush3.bf16.msra.mxu1 %v1321_v49  ;;  %v640_v54 = vld [vmem:[#allocation2] sm:$0xff]  ;;  %v1326_v60 = vld [vmem:[%s1622_s2 + $0x10] sm:$0xff]   ;;  %v1327_v61 = vld [vmem:[%s1622_s2 + $0x8] sm:$0xff]  }
 0x132   : > { %1194 = vmatprep.subr.bf16.mxu0 %v1322_v50  ;;  %1241 = vmatprep.subr.bf16.mxu1 %v1322_v50  ;;  %v647_v55 = vld [vmem:[#allocation2 + $0x40] sm:$0xff]  ;;  %v655_v56 = vpack.c.bf16 %v640_v54, %v639_v53  ;;  %v641_v63 = vld [vmem:[#allocation2 + $0x58] sm:$0xff]  ;;  %v649_v1 = vld [vmem:[#allocation2 + $0x10] sm:$0xff] }
 0x133   : > { %v648_v57 = vld [vmem:[#allocation2 + $0x20] sm:$0xff]  ;;  %v642_v0 = vld [vmem:[#allocation2 + $0x18] sm:$0xff]  ;;  %v643_v3 = vld [vmem:[#allocation2 + $0x50] sm:$0xff] }
 0x134   : > { %v659_v58 = vpack.c.bf16 %v648_v57, %v647_v55  ;;  %1208 = vmatprep.mubr.bf16.mxu0 %v655_v56  ;;  %v1328_v62 = vld [vmem:[%s1622_s2] sm:$0xff]   ;;  %v650_v2 = vld [vmem:[#allocation2 + $0x38] sm:$0xff]  ;;  %v644_v4 = vld [vmem:[#allocation2 + $0x68] sm:$0xff]  ;;  %v656_v7 = vpack.c.bf16 %v642_v0, %v641_v63 }
 0x135   : > { %1195 = vmatpush3.bf16.msra.mxu0 %v1322_v50  ;;  %1249 = vmatpush3.bf16.msra.mxu1 %v1322_v50  ;;  %v651_v5 = vld [vmem:[#allocation2 + $0x60] sm:$0xff]  ;;  %v652_v6 = vld [vmem:[#allocation2 + $0x70] sm:$0xff]  ;;  %v660_v8 = vpack.c.bf16 %v650_v2, %v649_v1  ;;  %v657_v9 = vpack.c.bf16 %v644_v4, %v643_v3  ;;  %v645_v11 = vld [vmem:[#allocation2 + $0x8] sm:$0xff] }
 0x136   : > { %1196 = vmatprep.subr.bf16.mxu0 %v1323_v51  ;;  %1242 = vmatprep.subr.bf16.mxu1 %v1323_v51  ;;  %v661_v10 = vpack.c.bf16 %v652_v6, %v651_v5  ;;  %v646_v12 = vld [vmem:[#allocation2 + $0x48] sm:$0xff]  ;;  %v653_v13 = vld [vmem:[#allocation2 + $0x78] sm:$0xff]  ;;  %v1037_v17 = vld [vmem:[%s1623_s3] ss:$0 sm:$0xff] }
 0x137   : > { %1216 = vmatprep.mubr.bf16.mxu1 %v659_v58  ;;  %v654_v14 = vld [vmem:[#allocation2 + $0x28] sm:$0xff]  ;;  %v658_v15 = vpack.c.bf16 %v646_v12, %v645_v11 }
 0x138   : > { %v662_v16 = vpack.c.bf16 %v654_v14, %v653_v13 }
 0x139   : > { %1197 = vmatpush3.bf16.msra.mxu0 %v1323_v51  ;;  %1250 = vmatpush3.bf16.msra.mxu1 %v1323_v51 }
 0x13a   : > { %1198 = vmatprep.subr.bf16.mxu0 %v1324_v52  ;;  %1243 = vmatprep.subr.bf16.mxu1 %v1324_v52 }
 0x13d   : > { %1199 = vmatpush3.bf16.msra.mxu0 %v1324_v52  ;;  %1251 = vmatpush3.bf16.msra.mxu1 %v1324_v52 }
 0x13e   : > { %1200 = vmatprep.subr.bf16.mxu0 %v1325_v59  ;;  %1244 = vmatprep.subr.bf16.mxu1 %v1325_v59 }
 0x141   : > { %1201 = vmatpush3.bf16.msra.mxu0 %v1325_v59  ;;  %1252 = vmatpush3.bf16.msra.mxu1 %v1325_v59 }
 0x142   : > { %1202 = vmatprep.subr.bf16.mxu0 %v1326_v60  ;;  %1245 = vmatprep.subr.bf16.mxu1 %v1326_v60 }
 0x145   : > { %1203 = vmatpush3.bf16.msra.mxu0 %v1326_v60  ;;  %1253 = vmatpush3.bf16.msra.mxu1 %v1326_v60 }
 0x146   : > { %1204 = vmatprep.subr.bf16.mxu0 %v1327_v61  ;;  %1246 = vmatprep.subr.bf16.mxu1 %v1327_v61 }
 0x149   : > { %1205 = vmatpush3.bf16.msra.mxu0 %v1327_v61  ;;  %1254 = vmatpush3.bf16.msra.mxu1 %v1327_v61 }
 0x14a   : > { %1206 = vmatprep.subr.bf16.mxu0 %v1328_v62  ;;  %1247 = vmatprep.subr.bf16.mxu1 %v1328_v62 }
 0x14d   : > { %1207 = vmatpush3.bf16.msra.mxu0 %v1328_v62  ;;  %1255 = vmatpush3.bf16.msra.mxu1 %v1328_v62 }
 0x150   : > { %1209 = vmatmul.mubr.bf16.vlgmr.msra.gmra.mxu0 %v656_v7  ;;  %1217 = vmatmul.mubr.bf16.vlgmr.msra.gmra.mxu1 %v660_v8 }
 0x151   : > { %1212 = vmatprep.mubr.bf16.mxu0 %v657_v9  ;;  %1220 = vmatprep.mubr.bf16.mxu1 %v661_v10 }
 0x158   : > { %1213 = vmatmul.mubr.bf16.gmra.mxu0 %v658_v15  ;;  %1221 = vmatmul.mubr.bf16.gmra.mxu1 %v662_v16 }
 0x210   : > { %v1210_v18 = vpop.f32.mrf.mxu0  ;;  %v1218_v19 = vpop.f32.mrf.mxu1 }
 0x211   : > { %v777_v20 = vadd.f32 %v1210_v18, %v1037_v17  ;;  %v809_v21 = vadd.f32 %v1218_v19, %v1037_v17 }
 0x212   : > { %v768_v22 = vpop.f32.mrf.mxu0  ;;  %v800_v23 = vpop.f32.mrf.mxu1 }
 0x213   : > { %1329 = vtanh.f32 %v777_v20  ;;  %v769_v24 = vadd.f32 %v1037_v17, %v768_v22  ;;  %v801_v25 = vadd.f32 %v1037_v17, %v800_v23 }
 0x214   : > { %1331 = vtanh.f32 %v809_v21  ;;  %v1211_v26 = vpop.f32.mrf.mxu0  ;;  %v1219_v27 = vpop.f32.mrf.mxu1 }
 0x215   : > { %1333 = vtanh.f32 %v769_v24  ;;  %v780_v28 = vadd.f32 %v1211_v26, %v1037_v17  ;;  %v812_v29 = vadd.f32 %v1219_v27, %v1037_v17 }
 0x216   : > { %1335 = vtanh.f32 %v801_v25  ;;  %v771_v30 = vpop.f32.mrf.mxu0  ;;  %v803_v31 = vpop.f32.mrf.mxu1 }
 0x217   : > { %1337 = vtanh.f32 %v780_v28  ;;  %v772_v32 = vadd.f32 %v1037_v17, %v771_v30  ;;  %v804_v33 = vadd.f32 %v1037_v17, %v803_v31 }
 0x218   : > { %1339 = vtanh.f32 %v812_v29  ;;  %v1214_v34 = vpop.f32.mrf.mxu0  ;;  %v1222_v35 = vpop.f32.mrf.mxu1 }
 0x219   : > { %1341 = vtanh.f32 %v772_v32  ;;  %v793_v36 = vadd.f32 %v1214_v34, %v1037_v17  ;;  %v825_v37 = vadd.f32 %v1222_v35, %v1037_v17 }
 0x21a   : > { %1343 = vtanh.f32 %v804_v33  ;;  %v784_v38 = vpop.f32.mrf.mxu0  ;;  %v816_v39 = vpop.f32.mrf.mxu1 }
 0x21b   : > { %1345 = vtanh.f32 %v793_v36  ;;  %v785_v40 = vadd.f32 %v1037_v17, %v784_v38  ;;  %v817_v41 = vadd.f32 %v1037_v17, %v816_v39 }
 0x21c   : > { %1347 = vtanh.f32 %v825_v37  ;;  %v1215_v42 = vpop.f32.mrf.mxu0  ;;  %v1223_v43 = vpop.f32.mrf.mxu1 }
 0x21d   : > { %1349 = vtanh.f32 %v785_v40  ;;  %v796_v44 = vadd.f32 %v1215_v42, %v1037_v17  ;;  %v828_v45 = vadd.f32 %v1223_v43, %v1037_v17 }
 0x21e   : > { %1351 = vtanh.f32 %v817_v41  ;;  %v787_v46 = vpop.f32.mrf.mxu0  ;;  %v819_v47 = vpop.f32.mrf.mxu1 }
 0x21f   : > { %1353 = vtanh.f32 %v796_v44  ;;  %v788_v48 = vadd.f32 %v1037_v17, %v787_v46  ;;  %v820_v49 = vadd.f32 %v1037_v17, %v819_v47 }
 0x220   : > { %v1330_v50 = vpop.eup %1329  ;;  %1355 = vtanh.f32 %v828_v45 }
 0x221   : > { %v1332_v51 = vpop.eup %1331  ;;  %1357 = vtanh.f32 %v788_v48 }
 0x222   : > { %v1334_v52 = vpop.eup %1333  ;;  %1359 = vtanh.f32 %v820_v49 }
 0x223   : > { %v1336_v53 = vpop.eup %1335 }
 0x224   : > { %v1338_v54 = vpop.eup %1337 }
 0x225   : > { %v1340_v55 = vpop.eup %1339  ;;  %v1089_v56 = vpack.c.bf16 %v1338_v54, %v1330_v50 }
 0x226   : > { %v1342_v57 = vpop.eup %1341  ;;  %v1109_v58 = vpack.c.bf16 %v1340_v55, %v1332_v51 }
 0x227   : > { %v1344_v59 = vpop.eup %1343  ;;  %1121 = vst [vmem:[%s1528_s27 + $0x8] sm:$0xff] %v1089_v56   ;;  %v1084_v60 = vpack.c.bf16 %v1342_v57, %v1334_v52 }
 0x228   : > { %v1346_v61 = vpop.eup %1345  ;;  %1125 = vst [vmem:[%s1528_s27 + $0x28] sm:$0xff] %v1109_v58   ;;  %v1104_v62 = vpack.c.bf16 %v1344_v59, %v1336_v53 }
 0x229   : > { %v1348_v63 = vpop.eup %1347  ;;  %1085 = vst [vmem:[%s1528_s27] sm:$0xff] %v1084_v60  }
 0x22a   : > { %v1350_v0 = vpop.eup %1349  ;;  %1124 = vst [vmem:[%s1528_s27 + $0x20] sm:$0xff] %v1104_v62  }
 0x22b   : > { %v1352_v1 = vpop.eup %1351 }
 0x22c   : > { %v1354_v2 = vpop.eup %1353 }
 0x22d   : > { %v1356_v3 = vpop.eup %1355  ;;  %v1099_v4 = vpack.c.bf16 %v1354_v2, %v1346_v61 }
 0x22e   : > { %v1358_v5 = vpop.eup %1357  ;;  %v1119_v6 = vpack.c.bf16 %v1356_v3, %v1348_v63 }
 0x22f   : > { %v1360_v7 = vpop.eup %1359  ;;  %1123 = vst [vmem:[%s1528_s27 + $0x18] sm:$0xff] %v1099_v4   ;;  %v1094_v8 = vpack.c.bf16 %v1358_v5, %v1350_v0 }
 0x230   : > { %1127 = vst [vmem:[%s1528_s27 + $0x38] sm:$0xff] %v1119_v6   ;;  %v1114_v9 = vpack.c.bf16 %v1360_v7, %v1352_v1 }
 0x231   : > { %1122 = vst [vmem:[%s1528_s27 + $0x10] sm:$0xff] %v1094_v8  }
 0x232   : > { %1126 = vst [vmem:[%s1528_s27 + $0x30] sm:$0xff] %v1114_v9  }
 0x233 PF: > { %s14_s21 = sadd.s32 1, %s1415_s21   ;;  %s1625_s15 = smov %s1395_s16 }
 0x234   : > { %p11_p13 = scmp.ge.s32.totalorder %s14_s21, 6   ;;  %s1626_s16 = smov %s1494_s28 }
 0x235   : > { %s1627_s17 = smov %s1407_s19  ;;  %s1628_s18 = smov %s1411_s20 }
 0x236   : > { %s1629_s19 = smov %s1632_s22  ;;  %s1630_s20 = smov %s1636_s23 }
 0x237   :  { %13 = sbr.rel (!%p11_p13) target bundleno = 4 (0x4), region = 121 }

// kernel: gin_forward.9
= control target key start
LH: loop header
LB: loop body
LE: loop exit
PB: predicated region body
PF: predicated region fallthrough
CT: control target
= control target key end

     0   :  { %s1973_s21 = smov 0   ;;  %s1975_s22 = smov 0   ;;  %s2187_s0 = inlined_call_operand.vmem [shape: s8[256,256], index: 0, kind: input, shape index: {}]   ;;  %s2188_s1 = inlined_call_operand.vmem [shape: bf16[256,128], index: 1, kind: input, shape index: {}]   ;;  %s2189_s2 = inlined_call_operand.vmem [shape: bf16[128,128], index: 2, kind: input, shape index: {}]   ;;  %s2190_s3 = inlined_call_operand.vmem [shape: f32[1,128], index: 3, kind: input, shape index: {}]   ;;  %s2191_s4 = inlined_call_operand.vmem [shape: bf16[128,128], index: 4, kind: input, shape index: {}]   ;;  %s2192_s5 = inlined_call_operand.vmem [shape: bf16[256,128], index: 5, kind: output, shape index: {0}]   ;;  %s2193_s6 = inlined_call_operand.vmem [shape: bf16[256,128], index: 6, kind: output, shape index: {1}]  }
   0x1   :  { %s1977_s23 = smov 0   ;;  %s1979_s24 = smov 0  }
   0x2   :  { %s1981_s25 = smov 0   ;;  %s1983_s26 = smov 0  }
   0x3   :  { %s1985_s27 = smov 0  }
   0x4 LB: > { %s26_s28 = sadd.s32 1, %s1927_s25  ;;  %s29_s29 = sadd.s32 1, %s1931_s26  ;;  %s1935_s27 = sphi %s1985_s27, %s17_s27   ;;  %s1931_s26 = sphi %s1983_s26, %s2199_s26   ;;  %s1927_s25 = sphi %s1981_s25, %s2198_s25   ;;  %s1923_s24 = sphi %s1979_s24, %s2197_s24   ;;  %s1919_s23 = sphi %s1977_s23, %s2196_s23   ;;  %s1915_s22 = sphi %s1975_s22, %s2195_s22   ;;  %s1911_s21 = sphi %s1973_s21, %s2194_s21  }
   0x5   : > { %p27_p0 = scmp.ge.s32.totalorder %s26_s28, 2  ;;  %p45_p1 = scmp.ne.s32.totalorder %s1915_s22, %s1911_s21 }
   0x6   : > { %p46_p2 = scmp.eq.s32.totalorder %s1935_s27, 0  ;;  %s38_s9 = sadd.s32 1, %s1915_s22 }
   0x7   : > { %s2201_s28 = smov (%p27_p0, %s26_s28), 0  ;;  %s2203_s29 = smov (!%p27_p0, %s29_s29), %s1931_s26 }
   0x8   : > { %p47_p3 = por %p46_p2, %p45_p1  ;;  %p31_p4 = scmp.ge.s32.totalorder %s2203_s29, 2 }
   0x9   : > { %s34_s30 = ssub.s32 %s1927_s25, %s2201_s28  ;;  %p1367_p6 = scmp.ge.s32.totalorder %s1935_s27, 4 }
   0xa   : > { %s2205_s29 = smov (%p31_p4, %s2203_s29), 0 }
   0xb   : > { %s33_s7 = ssub.s32 %s1931_s26, %s2205_s29  ;;  %219 = sbr.rel (%p1367_p6) target bundleno = 32 (0x20), region = 32 }
   0xc   : > { %s35_s8 = sor.u32 %s34_s30, %s33_s7 }
   0xd   : > { %p36_p5 = scmp.eq.s32.totalorder %s35_s8, 0 }
   0xf   : > { %s2024_s10 = scalar_select %p36_p5, %s1915_s22, %s38_s9  }
  0x10   : > { %222 = sbr.rel (!%p47_p3) target bundleno = 32 (0x20), region = 36  ;;  %s224_s11 = sand.u32 (%p47_p3), 1, %s1915_s22  }
  0x11   : > { %s1449_s12 = sshll.u32 (%p47_p3), %s1931_s26, 5  ;;  %s1368_s13 = sshll.u32 (%p47_p3), %s224_s11, 5 }
  0x12   : > { %s229_s14 = sadd.s32 (%p47_p3), %s1927_s25, %s1449_s12  ;;  %s226_s19 = scalar_lea.vmem (%p47_p3), [#allocation3], %s1368_s13 }
  0x13   : > { %s1371_s15 = sshll.u32 (%p47_p3), %s229_s14, 1 }
  0x14   : > { %s2033_s18 = scalar_lea.vmem (%p47_p3), %s2187_s0, %s1371_s15 }
  0x15   : > { %v248_v0 = vld [vmem:[%s2033_s18] sm:$0x3]  ;;  %v250_v1 = vld [vmem:[%s2033_s18 + $0x4] sm:$0x3]  ;;  %v252_v2 = vld [vmem:[%s2033_s18 + $0x8] sm:$0x3] }
  0x16   : > { %249 = vst [vmem:[%s226_s19] sm:$0x3] %v248_v0  ;;  %251 = vst [vmem:[%s226_s19 + $0x2] sm:$0x3] %v250_v1  ;;  %v254_v3 = vld [vmem:[%s2033_s18 + $0xc] sm:$0x3] }
  0x17   : > { %253 = vst [vmem:[%s226_s19 + $0x4] sm:$0x3] %v252_v2  ;;  %v256_v4 = vld [vmem:[%s2033_s18 + $0x10] sm:$0x3]  ;;  %v258_v5 = vld [vmem:[%s2033_s18 + $0x14] sm:$0x3] }
  0x18   : > { %255 = vst [vmem:[%s226_s19 + $0x6] sm:$0x3] %v254_v3  ;;  %257 = vst [vmem:[%s226_s19 + $0x8] sm:$0x3] %v256_v4  ;;  %v260_v6 = vld [vmem:[%s2033_s18 + $0x18] sm:$0x3] }
  0x19   : > { %259 = vst [vmem:[%s226_s19 + $0xa] sm:$0x3] %v258_v5  ;;  %v262_v7 = vld [vmem:[%s2033_s18 + $0x1c] sm:$0x3]  ;;  %v264_v8 = vld [vmem:[%s2033_s18 + $0x20] sm:$0x3] }
  0x1a   : > { %261 = vst [vmem:[%s226_s19 + $0xc] sm:$0x3] %v260_v6  ;;  %263 = vst [vmem:[%s226_s19 + $0xe] sm:$0x3] %v262_v7  ;;  %v266_v9 = vld [vmem:[%s2033_s18 + $0x24] sm:$0x3] }
  0x1b   : > { %265 = vst [vmem:[%s226_s19 + $0x10] sm:$0x3] %v264_v8  ;;  %v268_v10 = vld [vmem:[%s2033_s18 + $0x28] sm:$0x3]  ;;  %v270_v11 = vld [vmem:[%s2033_s18 + $0x2c] sm:$0x3] }
  0x1c   : > { %267 = vst [vmem:[%s226_s19 + $0x12] sm:$0x3] %v266_v9  ;;  %269 = vst [vmem:[%s226_s19 + $0x14] sm:$0x3] %v268_v10  ;;  %v272_v12 = vld [vmem:[%s2033_s18 + $0x30] sm:$0x3] }
  0x1d   : > { %271 = vst [vmem:[%s226_s19 + $0x16] sm:$0x3] %v270_v11  ;;  %v274_v13 = vld [vmem:[%s2033_s18 + $0x34] sm:$0x3]  ;;  %v276_v14 = vld [vmem:[%s2033_s18 + $0x38] sm:$0x3] }
  0x1e   : > { %273 = vst [vmem:[%s226_s19 + $0x18] sm:$0x3] %v272_v12  ;;  %275 = vst [vmem:[%s226_s19 + $0x1a] sm:$0x3] %v274_v13  ;;  %v278_v15 = vld [vmem:[%s2033_s18 + $0x3c] sm:$0x3] }
  0x1f   : > { %277 = vst [vmem:[%s226_s19 + $0x1c] sm:$0x3] %v276_v14  ;;  %279 = vst [vmem:[%s226_s19 + $0x1e] sm:$0x3] %v278_v15 }
  0x20 PF: > { %p1372_p7 = scmp.ge.s32.totalorder %s1935_s27, 1  ;;  %p334_p8 = scmp.lt.s32.totalorder %s1935_s27, 5 }
  0x22   : > { %p335_p9 = pnand %p1372_p7, %p334_p8 }
  0x23   : > { %s341_s20 = sand.u32 (!%p335_p9), 1, %s1911_s21   ;;  %s1374_s30 = sshll.u32 (!%p335_p9), %s1923_s24, 4 }
  0x24   : > { %338 = sbr.rel (%p335_p9) target bundleno = 794 (0x31a), region = 77  ;;  %s1373_s7 = sshll.u32 (!%p335_p9), %s341_s20, 5 }
  0x25   : > { %p377_p10 = scmp.lt.s32.totalorder (!%p335_p9), %s1374_s30, 31  ;;  %s2065_s16 = scalar_lea.vmem (!%p335_p9), [#allocation3], %s1373_s7 }
  0x26   : > { %p1378_p11 = scmp.ne.s32.totalorder (!%p335_p9), %s1919_s23, 0 }
  0x29   : > { %s2207_s30 = smov (!%p377_p10, %s1374_s30), 31  ;;  %392 = sbr.rel (%p1378_p11) target bundleno = 55 (0x37), region = 85 }
  0x2a   : > { %s1375_s8 = sshll.u32 %s2207_s30, 2 }
  0x2b   : > { %s2058_s12 = scalar_lea.vmem %s2192_s5, %s1375_s8  ;;  %s2063_s15 = scalar_lea.vmem %s2193_s6, %s1375_s8 }
  0x2e   : > { %v1937_v16 = vmov 0.0  }
  0x2f   : > { %393 = vst [vmem:[#allocation2 + $0x30] sm:$0xff] %v1937_v16  ;;  %394 = vst [vmem:[#allocation2] sm:$0xff] %v1937_v16 }
  0x30   : > { %395 = vst [vmem:[#allocation2 + $0x58] sm:$0xff] %v1937_v16  ;;  %396 = vst [vmem:[#allocation2 + $0x18] sm:$0xff] %v1937_v16 }
  0x31   : > { %397 = vst [vmem:[#allocation2 + $0x50] sm:$0xff] %v1937_v16  ;;  %398 = vst [vmem:[#allocation2 + $0x68] sm:$0xff] %v1937_v16 }
  0x32   : > { %399 = vst [vmem:[#allocation2 + $0x8] sm:$0xff] %v1937_v16  ;;  %400 = vst [vmem:[#allocation2 + $0x48] sm:$0xff] %v1937_v16 }
  0x33   : > { %401 = vst [vmem:[#allocation2 + $0x40] sm:$0xff] %v1937_v16  ;;  %402 = vst [vmem:[#allocation2 + $0x20] sm:$0xff] %v1937_v16 }
  0x34   : > { %403 = vst [vmem:[#allocation2 + $0x10] sm:$0xff] %v1937_v16  ;;  %404 = vst [vmem:[#allocation2 + $0x38] sm:$0xff] %v1937_v16 }
  0x35   : > { %405 = vst [vmem:[#allocation2 + $0x60] sm:$0xff] %v1937_v16  ;;  %406 = vst [vmem:[#allocation2 + $0x70] sm:$0xff] %v1937_v16 }
  0x36   : > { %407 = vst [vmem:[#allocation2 + $0x78] sm:$0xff] %v1937_v16  ;;  %408 = vst [vmem:[#allocation2 + $0x28] sm:$0xff] %v1937_v16 }
  0x37 PF: > { %s1379_s21 = sshll.u32 %s1919_s23, 7  ;;  %v446_v17 = vld [vmem:[%s2065_s16] sm:$0x3]  ;;  %v447_v18 = vld [vmem:[%s2065_s16 + $0x2] sm:$0x3]  ;;  %v432_v1 = vld [vmem:[#allocation2 + $0x58] sm:$0xff] }
  0x38   : > { %s410_s24 = sshra.s32 %s1379_s21, 3  ;;  %v462_v19 = vunpack.c.l.s8.bf16 %v446_v17  ;;  %v463_v20 = vunpack.c.l.s8.bf16 %v447_v18  ;;  %v454_v21 = vld [vmem:[%s2065_s16 + $0x10] sm:$0x3]  ;;  %v455_v22 = vld [vmem:[%s2065_s16 + $0x12] sm:$0x3]  ;;  %v433_v11 = vld [vmem:[#allocation2 + $0x18] sm:$0xff] }
  0x39   : > { %s1380_s17 = sshll.u32 %s410_s24, 2  ;;  %v470_v23 = vunpack.c.l.s8.bf16 %v454_v21  ;;  %v471_v24 = vunpack.c.l.s8.bf16 %v455_v22  ;;  %v448_v34 = vld [vmem:[%s2065_s16 + $0x4] sm:$0x3]  ;;  %v449_v35 = vld [vmem:[%s2065_s16 + $0x6] sm:$0x3]  ;;  %v430_v5 = vld [vmem:[#allocation2 + $0x30] sm:$0xff] }
  0x3a   : > { %s2076_s20 = scalar_lea.vmem %s2188_s1, %s1380_s17  ;;  %v1381_v25 = vcombine.low %v462_v19, %v463_v20  ;;  %v456_v36 = vld [vmem:[%s2065_s16 + $0x14] sm:$0x3]  ;;  %v457_v38 = vld [vmem:[%s2065_s16 + $0x16] sm:$0x3]  ;;  %v450_v39 = vld [vmem:[%s2065_s16 + $0x8] sm:$0x3]  ;;  %v464_v43 = vunpack.c.l.s8.bf16 %v448_v34  ;;  %v465_v44 = vunpack.c.l.s8.bf16 %v449_v35 }
  0x3b   : > { %v1793_v26 = vld [vmem:[%s2076_s20 + $0x38] sm:$0xff]   ;;  %v1794_v27 = vld [vmem:[%s2076_s20 + $0x30] sm:$0xff]   ;;  %v1385_v28 = vcombine.low %v470_v23, %v471_v24  ;;  %v1795_v29 = vld [vmem:[%s2076_s20 + $0x28] sm:$0xff]   ;;  %v472_v45 = vunpack.c.l.s8.bf16 %v456_v36  ;;  %v473_v46 = vunpack.c.l.s8.bf16 %v457_v38  ;;  %v466_v47 = vunpack.c.l.s8.bf16 %v450_v39  ;;  %p1397_p12 = scmp.ne.s32.totalorder %s1919_s23, 1 }
  0x3c   : > { %1640 = vmatprep.mubr.bf16.mxu0 %v1381_v25  ;;  %1624 = vmatprep.subr.bf16.mxu0 %v1793_v26  ;;  %v1796_v30 = vld [vmem:[%s2076_s20 + $0x20] sm:$0xff]   ;;  %v1797_v31 = vld [vmem:[%s2076_s20 + $0x18] sm:$0xff]   ;;  %v1798_v32 = vld [vmem:[%s2076_s20 + $0x10] sm:$0xff]   ;;  %v1382_v51 = vcombine.low %v464_v43, %v465_v44 }
  0x3d   : > { %1720 = vmatprep.subr.bf16.mxu1 %v1793_v26  ;;  %1625 = vmatpush3.bf16.msra.mxu0 %v1793_v26  ;;  %v1799_v33 = vld [vmem:[%s2076_s20 + $0x8] sm:$0xff]   ;;  %v1800_v37 = vld [vmem:[%s2076_s20] sm:$0xff]   ;;  %v458_v41 = vld [vmem:[%s2065_s16 + $0x18] sm:$0x3]  ;;  %v1386_v52 = vcombine.low %v472_v45, %v473_v46 }
  0x3e   : > { %1728 = vmatpush3.bf16.msra.mxu1 %v1793_v26  ;;  %1626 = vmatprep.subr.bf16.mxu0 %v1794_v27  ;;  %v451_v40 = vld [vmem:[%s2065_s16 + $0xa] sm:$0x3]  ;;  %v459_v42 = vld [vmem:[%s2065_s16 + $0x1a] sm:$0x3]  ;;  %v474_v49 = vunpack.c.l.s8.bf16 %v458_v41  ;;  %v452_v53 = vld [vmem:[%s2065_s16 + $0xc] sm:$0x3] }
  0x3f   : > { %1721 = vmatprep.subr.bf16.mxu1 %v1794_v27  ;;  %1648 = vmatprep.mubr.bf16.mxu1 %v1385_v28  ;;  %v467_v48 = vunpack.c.l.s8.bf16 %v451_v40  ;;  %v475_v50 = vunpack.c.l.s8.bf16 %v459_v42  ;;  %v453_v56 = vld [vmem:[%s2065_s16 + $0xe] sm:$0x3]  ;;  %v460_v57 = vld [vmem:[%s2065_s16 + $0x1c] sm:$0x3]  ;;  %v461_v58 = vld [vmem:[%s2065_s16 + $0x1e] sm:$0x3]  ;;  %v468_v59 = vunpack.c.l.s8.bf16 %v452_v53 }
  0x40   : > { %v469_v60 = vunpack.c.l.s8.bf16 %v453_v56  ;;  %v476_v61 = vunpack.c.l.s8.bf16 %v460_v57  ;;  %v477_v62 = vunpack.c.l.s8.bf16 %v461_v58  ;;  %v440_v2 = vld [vmem:[#allocation2 + $0x10] sm:$0xff]  ;;  %v438_v6 = vld [vmem:[#allocation2 + $0x40] sm:$0xff]  ;;  %v441_v12 = vld [vmem:[#allocation2 + $0x38] sm:$0xff] }
  0x41   : > { %1627 = vmatpush3.bf16.msra.mxu0 %v1794_v27  ;;  %v1383_v54 = vcombine.low %v466_v47, %v467_v48  ;;  %v1387_v55 = vcombine.low %v474_v49, %v475_v50  ;;  %v431_v17 = vld [vmem:[#allocation2] sm:$0xff]  ;;  %v436_v23 = vld [vmem:[#allocation2 + $0x8] sm:$0xff]  ;;  %v444_v24 = vld [vmem:[#allocation2 + $0x78] sm:$0xff] }
  0x42   : > { %1729 = vmatpush3.bf16.msra.mxu1 %v1794_v27  ;;  %1628 = vmatprep.subr.bf16.mxu0 %v1795_v29  ;;  %v1384_v63 = vcombine.low %v468_v59, %v469_v60  ;;  %v1388_v0 = vcombine.low %v476_v61, %v477_v62  ;;  %v439_v18 = vld [vmem:[#allocation2 + $0x20] sm:$0xff]  ;;  %v437_v35 = vld [vmem:[#allocation2 + $0x48] sm:$0xff]  ;;  %v443_v42 = vld [vmem:[#allocation2 + $0x70] sm:$0xff] }
  0x43   : > { %1722 = vmatprep.subr.bf16.mxu1 %v1795_v29  ;;  %v445_v36 = vld [vmem:[#allocation2 + $0x28] sm:$0xff] }
  0x44   : > { %v435_v41 = vld [vmem:[#allocation2 + $0x68] sm:$0xff] }
  0x45   : > { %1629 = vmatpush3.bf16.msra.mxu0 %v1795_v29 }
  0x46   : > { %1730 = vmatpush3.bf16.msra.mxu1 %v1795_v29  ;;  %1630 = vmatprep.subr.bf16.mxu0 %v1796_v30  ;;  %v434_v29 = vld [vmem:[#allocation2 + $0x50] sm:$0xff] }
  0x47   : > { %1723 = vmatprep.subr.bf16.mxu1 %v1796_v30 }
  0x49   : > { %1631 = vmatpush3.bf16.msra.mxu0 %v1796_v30 }
  0x4a   : > { %1731 = vmatpush3.bf16.msra.mxu1 %v1796_v30  ;;  %1632 = vmatprep.subr.bf16.mxu0 %v1797_v31  ;;  %v442_v30 = vld [vmem:[#allocation2 + $0x60] sm:$0xff] }
  0x4b   : > { %1724 = vmatprep.subr.bf16.mxu1 %v1797_v31 }
  0x4d   : > { %1633 = vmatpush3.bf16.msra.mxu0 %v1797_v31 }
  0x4e   : > { %1732 = vmatpush3.bf16.msra.mxu1 %v1797_v31  ;;  %1634 = vmatprep.subr.bf16.mxu0 %v1798_v32 }
  0x4f   : > { %1725 = vmatprep.subr.bf16.mxu1 %v1798_v32 }
  0x51   : > { %1635 = vmatpush3.bf16.msra.mxu0 %v1798_v32 }
  0x52   : > { %1733 = vmatpush3.bf16.msra.mxu1 %v1798_v32  ;;  %1636 = vmatprep.subr.bf16.mxu0 %v1799_v33 }
  0x53   : > { %1726 = vmatprep.subr.bf16.mxu1 %v1799_v33 }
  0x55   : > { %1637 = vmatpush3.bf16.msra.mxu0 %v1799_v33 }
  0x56   : > { %1734 = vmatpush3.bf16.msra.mxu1 %v1799_v33  ;;  %1638 = vmatprep.subr.bf16.mxu0 %v1800_v37 }
  0x57   : > { %1727 = vmatprep.subr.bf16.mxu1 %v1800_v37 }
  0x59   : > { %1639 = vmatpush3.bf16.msra.mxu0 %v1800_v37 }
  0x5a   : > { %1735 = vmatpush3.bf16.msra.mxu1 %v1800_v37 }
  0x5c   : > { %1641 = vmatmul.mubr.bf16.vlgmr.msra.gmra.mxu0 %v1382_v51 }
  0x5d   : > { %1649 = vmatmul.mubr.bf16.vlgmr.msra.gmra.mxu1 %v1386_v52  ;;  %1644 = vmatprep.mubr.bf16.mxu0 %v1383_v54 }
  0x5e   : > { %1652 = vmatprep.mubr.bf16.mxu1 %v1387_v55 }
  0x64   : > { %1645 = vmatmul.mubr.bf16.gmra.mxu0 %v1384_v63 }
  0x65   : > { %1653 = vmatmul.mubr.bf16.gmra.mxu1 %v1388_v0 }
 0x11c   : > { %v1642_v3 = vpop.f32.mrf.mxu0 }
 0x11d   : > { %v1650_v4 = vpop.f32.mrf.mxu1  ;;  %v673_v7 = vadd.f32 %v1642_v3, %v432_v1 }
 0x11e   : > { %v681_v8 = vadd.f32 %v1650_v4, %v440_v2  ;;  %v608_v9 = vpop.f32.mrf.mxu0 }
 0x11f   : > { %v640_v10 = vpop.f32.mrf.mxu1  ;;  %689 = vst [vmem:[#allocation2 + $0x58] sm:$0xff] %v673_v7  ;;  %v671_v13 = vadd.f32 %v608_v9, %v430_v5 }
 0x120   : > { %697 = vst [vmem:[#allocation2 + $0x10] sm:$0xff] %v681_v8  ;;  %v679_v14 = vadd.f32 %v640_v10, %v438_v6  ;;  %v1643_v15 = vpop.f32.mrf.mxu0 }
 0x121   : > { %v1651_v16 = vpop.f32.mrf.mxu1  ;;  %687 = vst [vmem:[#allocation2 + $0x30] sm:$0xff] %v671_v13  ;;  %v674_v19 = vadd.f32 %v1643_v15, %v433_v11 }
 0x122   : > { %695 = vst [vmem:[#allocation2 + $0x40] sm:$0xff] %v679_v14  ;;  %v682_v20 = vadd.f32 %v1651_v16, %v441_v12  ;;  %v611_v21 = vpop.f32.mrf.mxu0 }
 0x123   : > { %v643_v22 = vpop.f32.mrf.mxu1  ;;  %690 = vst [vmem:[#allocation2 + $0x18] sm:$0xff] %v674_v19  ;;  %v672_v25 = vadd.f32 %v611_v21, %v431_v17 }
 0x124   : > { %698 = vst [vmem:[#allocation2 + $0x38] sm:$0xff] %v682_v20  ;;  %v680_v26 = vadd.f32 %v643_v22, %v439_v18  ;;  %v1646_v27 = vpop.f32.mrf.mxu0 }
 0x125   : > { %v1654_v28 = vpop.f32.mrf.mxu1  ;;  %688 = vst [vmem:[#allocation2] sm:$0xff] %v672_v25  ;;  %v677_v31 = vadd.f32 %v1646_v27, %v436_v23 }
 0x126   : > { %696 = vst [vmem:[#allocation2 + $0x20] sm:$0xff] %v680_v26  ;;  %v685_v32 = vadd.f32 %v1654_v28, %v444_v24  ;;  %v624_v33 = vpop.f32.mrf.mxu0 }
 0x127   : > { %v656_v34 = vpop.f32.mrf.mxu1  ;;  %693 = vst [vmem:[#allocation2 + $0x8] sm:$0xff] %v677_v31  ;;  %v675_v37 = vadd.f32 %v624_v33, %v434_v29 }
 0x128   : > { %701 = vst [vmem:[#allocation2 + $0x78] sm:$0xff] %v685_v32  ;;  %v683_v38 = vadd.f32 %v656_v34, %v442_v30  ;;  %v1647_v39 = vpop.f32.mrf.mxu0 }
 0x129   : > { %v1655_v40 = vpop.f32.mrf.mxu1  ;;  %691 = vst [vmem:[#allocation2 + $0x50] sm:$0xff] %v675_v37  ;;  %v678_v43 = vadd.f32 %v1647_v39, %v437_v35 }
 0x12a   : > { %699 = vst [vmem:[#allocation2 + $0x60] sm:$0xff] %v683_v38  ;;  %v686_v44 = vadd.f32 %v1655_v40, %v445_v36  ;;  %v627_v45 = vpop.f32.mrf.mxu0  ;;  %706 = sbr.rel (%p1397_p12) target bundleno = 794 (0x31a), region = 89 }
 0x12b   : > { %v659_v46 = vpop.f32.mrf.mxu1  ;;  %694 = vst [vmem:[#allocation2 + $0x48] sm:$0xff] %v678_v43  ;;  %v676_v47 = vadd.f32 %v627_v45, %v435_v41 }
 0x12c   : > { %702 = vst [vmem:[#allocation2 + $0x28] sm:$0xff] %v686_v44  ;;  %v684_v48 = vadd.f32 %v659_v46, %v443_v42 }
 0x12d   : > { %692 = vst [vmem:[#allocation2 + $0x68] sm:$0xff] %v676_v47 }
 0x12e   : > { %700 = vst [vmem:[#allocation2 + $0x70] sm:$0xff] %v684_v48 }
 0x12f   : > { %v1801_v49 = vld [vmem:[%s2189_s2 + $0x38] sm:$0xff]   ;;  %v1802_v50 = vld [vmem:[%s2189_s2 + $0x30] sm:$0xff]   ;;  %v1803_v51 = vld [vmem:[%s2189_s2 + $0x28] sm:$0xff]  }
 0x130   : > { %1656 = vmatprep.subr.bf16.mxu0 %v1801_v49  ;;  %v1804_v52 = vld [vmem:[%s2189_s2 + $0x20] sm:$0xff]   ;;  %v707_v53 = vld [vmem:[#allocation2 + $0x30] sm:$0xff]  ;;  %v1805_v56 = vld [vmem:[%s2189_s2 + $0x18] sm:$0xff]  }
 0x131   : > { %1657 = vmatpush3.bf16.msra.mxu0 %v1801_v49  ;;  %v708_v54 = vld [vmem:[#allocation2] sm:$0xff]  ;;  %v1806_v57 = vld [vmem:[%s2189_s2 + $0x10] sm:$0xff]   ;;  %v1809_v58 = vld [vmem:[%s2191_s4 + $0x38] sm:$0xff]  }
 0x132   : > { %1658 = vmatprep.subr.bf16.mxu0 %v1802_v50  ;;  %v723_v55 = vpack.c.bf16 %v708_v54, %v707_v53  ;;  %v1810_v59 = vld [vmem:[%s2191_s4 + $0x30] sm:$0xff]   ;;  %1688 = vmatprep.subr.bf16.mxu1 %v1809_v58  ;;  %v1807_v60 = vld [vmem:[%s2189_s2 + $0x8] sm:$0xff]   ;;  %v1808_v61 = vld [vmem:[%s2189_s2] sm:$0xff]  }
 0x133   : > { %1689 = vmatpush3.bf16.msra.mxu1 %v1809_v58  ;;  %v709_v62 = vld [vmem:[#allocation2 + $0x58] sm:$0xff]  ;;  %v711_v0 = vld [vmem:[#allocation2 + $0x50] sm:$0xff]  ;;  %v713_v4 = vld [vmem:[#allocation2 + $0x8] sm:$0xff] }
 0x134   : > { %1672 = vmatprep.mubr.bf16.mxu0 %v723_v55  ;;  %1690 = vmatprep.subr.bf16.mxu1 %v1810_v59  ;;  %v710_v63 = vld [vmem:[#allocation2 + $0x18] sm:$0xff]  ;;  %v712_v1 = vld [vmem:[#allocation2 + $0x68] sm:$0xff]  ;;  %v715_v6 = vld [vmem:[#allocation2 + $0x40] sm:$0xff] }
 0x135   : > { %1659 = vmatpush3.bf16.msra.mxu0 %v1802_v50  ;;  %v724_v2 = vpack.c.bf16 %v710_v63, %v709_v62  ;;  %v725_v3 = vpack.c.bf16 %v712_v1, %v711_v0  ;;  %v714_v5 = vld [vmem:[#allocation2 + $0x48] sm:$0xff]  ;;  %v716_v7 = vld [vmem:[#allocation2 + $0x20] sm:$0xff]  ;;  %v717_v10 = vld [vmem:[#allocation2 + $0x10] sm:$0xff] }
 0x136   : > { %1660 = vmatprep.subr.bf16.mxu0 %v1803_v51  ;;  %v726_v8 = vpack.c.bf16 %v714_v5, %v713_v4  ;;  %v727_v9 = vpack.c.bf16 %v716_v7, %v715_v6  ;;  %v718_v11 = vld [vmem:[#allocation2 + $0x38] sm:$0xff]  ;;  %v719_v12 = vld [vmem:[#allocation2 + $0x60] sm:$0xff]  ;;  %v720_v13 = vld [vmem:[#allocation2 + $0x70] sm:$0xff] }
 0x137   : > { %1691 = vmatpush3.bf16.msra.mxu1 %v1810_v59  ;;  %v728_v14 = vpack.c.bf16 %v718_v11, %v717_v10  ;;  %v729_v15 = vpack.c.bf16 %v720_v13, %v719_v12  ;;  %v721_v16 = vld [vmem:[#allocation2 + $0x78] sm:$0xff]  ;;  %v722_v17 = vld [vmem:[#allocation2 + $0x28] sm:$0xff]  ;;  %v1812_v20 = vld [vmem:[%s2191_s4 + $0x20] sm:$0xff]  }
 0x138   : > { %v730_v18 = vpack.c.bf16 %v722_v17, %v721_v16  ;;  %v1811_v19 = vld [vmem:[%s2191_s4 + $0x28] sm:$0xff]   ;;  %v1813_v21 = vld [vmem:[%s2191_s4 + $0x18] sm:$0xff]   ;;  %v1814_v22 = vld [vmem:[%s2191_s4 + $0x10] sm:$0xff]  }
 0x139   : > { %1661 = vmatpush3.bf16.msra.mxu0 %v1803_v51  ;;  %1692 = vmatprep.subr.bf16.mxu1 %v1811_v19  ;;  %v1815_v23 = vld [vmem:[%s2191_s4 + $0x8] sm:$0xff]   ;;  %v1816_v24 = vld [vmem:[%s2191_s4] sm:$0xff]  }
 0x13a   : > { %1662 = vmatprep.subr.bf16.mxu0 %v1804_v52  ;;  %v1398_v25 = vld [vmem:[%s2190_s3] ss:$0 sm:$0xff] }
 0x13b   : > { %1693 = vmatpush3.bf16.msra.mxu1 %v1811_v19 }
 0x13c   : > { %1694 = vmatprep.subr.bf16.mxu1 %v1812_v20 }
 0x13d   : > { %1663 = vmatpush3.bf16.msra.mxu0 %v1804_v52 }
 0x13e   : > { %1664 = vmatprep.subr.bf16.mxu0 %v1805_v56 }
 0x13f   : > { %1695 = vmatpush3.bf16.msra.mxu1 %v1812_v20 }
 0x140   : > { %1696 = vmatprep.subr.bf16.mxu1 %v1813_v21 }
 0x141   : > { %1665 = vmatpush3.bf16.msra.mxu0 %v1805_v56 }
 0x142   : > { %1666 = vmatprep.subr.bf16.mxu0 %v1806_v57 }
 0x143   : > { %1697 = vmatpush3.bf16.msra.mxu1 %v1813_v21 }
 0x144   : > { %1698 = vmatprep.subr.bf16.mxu1 %v1814_v22 }
 0x145   : > { %1667 = vmatpush3.bf16.msra.mxu0 %v1806_v57 }
 0x146   : > { %1668 = vmatprep.subr.bf16.mxu0 %v1807_v60 }
 0x147   : > { %1699 = vmatpush3.bf16.msra.mxu1 %v1814_v22 }
 0x148   : > { %1700 = vmatprep.subr.bf16.mxu1 %v1815_v23 }
 0x149   : > { %1669 = vmatpush3.bf16.msra.mxu0 %v1807_v60 }
 0x14a   : > { %1670 = vmatprep.subr.bf16.mxu0 %v1808_v61 }
 0x14b   : > { %1701 = vmatpush3.bf16.msra.mxu1 %v1815_v23 }
 0x14c   : > { %1702 = vmatprep.subr.bf16.mxu1 %v1816_v24 }
 0x14d   : > { %1671 = vmatpush3.bf16.msra.mxu0 %v1808_v61 }
 0x14f   : > { %1703 = vmatpush3.bf16.msra.mxu1 %v1816_v24 }
 0x150   : > { %1673 = vmatmul.mubr.bf16.vlgmr.msra.gmra.mxu0 %v724_v2 }
 0x151   : > { %1676 = vmatprep.mubr.bf16.mxu0 %v725_v3 }
 0x158   : > { %1677 = vmatmul.mubr.bf16.gmra.mxu0 %v726_v8 }
 0x159   : > { %1680 = vmatprep.mubr.bf16.mxu0 %v727_v9 }
 0x160   : > { %1681 = vmatmul.mubr.bf16.gmra.mxu0 %v728_v14 }
 0x161   : > { %1684 = vmatprep.mubr.bf16.mxu0 %v729_v15 }
 0x168   : > { %1685 = vmatmul.mubr.bf16.gmra.mxu0 %v730_v18 }
 0x210   : > { %v1674_v26 = vpop.f32.mrf.mxu0 }
 0x211   : > { %v845_v27 = vadd.f32 %v1674_v26, %v1398_v25 }
 0x212   : > { %v836_v28 = vpop.f32.mrf.mxu0 }
 0x213   : > { %v837_v29 = vadd.f32 %v1398_v25, %v836_v28  ;;  %1817 = vtanh.f32 %v845_v27 }
 0x214   : > { %v1675_v30 = vpop.f32.mrf.mxu0 }
 0x215   : > { %v848_v31 = vadd.f32 %v1675_v30, %v1398_v25 }
 0x216   : > { %v839_v32 = vpop.f32.mrf.mxu0 }
 0x217   : > { %1819 = vtanh.f32 %v848_v31  ;;  %v840_v33 = vadd.f32 %v1398_v25, %v839_v32 }
 0x218   : > { %1821 = vtanh.f32 %v837_v29  ;;  %v1678_v34 = vpop.f32.mrf.mxu0 }
 0x219   : > { %1823 = vtanh.f32 %v840_v33  ;;  %v861_v35 = vadd.f32 %v1678_v34, %v1398_v25 }
 0x21a   : > { %v852_v36 = vpop.f32.mrf.mxu0 }
 0x21b   : > { %v853_v37 = vadd.f32 %v1398_v25, %v852_v36  ;;  %1825 = vtanh.f32 %v861_v35 }
 0x21c   : > { %v1679_v38 = vpop.f32.mrf.mxu0 }
 0x21d   : > { %v864_v39 = vadd.f32 %v1679_v38, %v1398_v25 }
 0x21e   : > { %v855_v40 = vpop.f32.mrf.mxu0 }
 0x21f   : > { %1827 = vtanh.f32 %v864_v39  ;;  %v856_v41 = vadd.f32 %v1398_v25, %v855_v40 }
 0x220   : > { %1829 = vtanh.f32 %v853_v37  ;;  %v1682_v42 = vpop.f32.mrf.mxu0  ;;  %v1818_v45 = vpop.eup %1817 }
 0x221   : > { %1831 = vtanh.f32 %v856_v41  ;;  %v877_v43 = vadd.f32 %v1682_v42, %v1398_v25 }
 0x222   : > { %v868_v44 = vpop.f32.mrf.mxu0 }
 0x223   : > { %v869_v47 = vadd.f32 %v1398_v25, %v868_v44  ;;  %1833 = vtanh.f32 %v877_v43 }
 0x224   : > { %v1820_v46 = vpop.eup %1819  ;;  %v1683_v48 = vpop.f32.mrf.mxu0 }
 0x225   : > { %v1822_v49 = vpop.eup %1821  ;;  %v880_v50 = vadd.f32 %v1683_v48, %v1398_v25  ;;  %v916_v51 = vpack.c.bf16 %v1820_v46, %v1818_v45 }
 0x226   : > { %v1824_v52 = vpop.eup %1823  ;;  %v871_v53 = vpop.f32.mrf.mxu0 }
 0x227   : > { %1835 = vtanh.f32 %v880_v50  ;;  %v872_v54 = vadd.f32 %v1398_v25, %v871_v53  ;;  %v915_v55 = vpack.c.bf16 %v1824_v52, %v1822_v49  ;;  %1562 = vst [vmem:[%s2058_s12 + $0x8] sm:$0xff] %v916_v51  }
 0x228   : > { %1837 = vtanh.f32 %v869_v47  ;;  %v1686_v56 = vpop.f32.mrf.mxu0  ;;  %v1826_v59 = vpop.eup %1825 }
 0x229   : > { %1839 = vtanh.f32 %v872_v54  ;;  %1486 = vst [vmem:[%s2058_s12] sm:$0xff] %v915_v55   ;;  %1704 = vmatprep.mubr.bf16.mxu1 %v915_v55  ;;  %v893_v57 = vadd.f32 %v1686_v56, %v1398_v25 }
 0x22a   : > { %v884_v58 = vpop.f32.mrf.mxu0  ;;  %1705 = vmatmul.mubr.bf16.vlgmr.msra.gmra.mxu1 %v916_v51 }
 0x22b   : > { %v885_v61 = vadd.f32 %v1398_v25, %v884_v58  ;;  %1841 = vtanh.f32 %v893_v57 }
 0x22c   : > { %v1828_v60 = vpop.eup %1827  ;;  %v1687_v62 = vpop.f32.mrf.mxu0 }
 0x22d   : > { %v1830_v63 = vpop.eup %1829  ;;  %v896_v0 = vadd.f32 %v1687_v62, %v1398_v25  ;;  %v918_v1 = vpack.c.bf16 %v1828_v60, %v1826_v59 }
 0x22e   : > { %v1832_v2 = vpop.eup %1831  ;;  %v887_v3 = vpop.f32.mrf.mxu0 }
 0x22f   : > { %1843 = vtanh.f32 %v896_v0  ;;  %v888_v4 = vadd.f32 %v1398_v25, %v887_v3  ;;  %v917_v5 = vpack.c.bf16 %v1832_v2, %v1830_v63  ;;  %1564 = vst [vmem:[%s2058_s12 + $0x18] sm:$0xff] %v918_v1  }
 0x230   : > { %1845 = vtanh.f32 %v885_v61  ;;  %v1834_v6 = vpop.eup %1833 }
 0x231   : > { %1847 = vtanh.f32 %v888_v4  ;;  %1563 = vst [vmem:[%s2058_s12 + $0x10] sm:$0xff] %v917_v5   ;;  %1708 = vmatprep.mubr.bf16.mxu1 %v917_v5 }
 0x232   : > { %1709 = vmatmul.mubr.bf16.gmra.mxu1 %v918_v1 }
 0x234   : > { %v1836_v7 = vpop.eup %1835 }
 0x235   : > { %v1838_v8 = vpop.eup %1837  ;;  %v920_v9 = vpack.c.bf16 %v1836_v7, %v1834_v6 }
 0x236   : > { %v1840_v10 = vpop.eup %1839 }
 0x237   : > { %v919_v11 = vpack.c.bf16 %v1840_v10, %v1838_v8  ;;  %1566 = vst [vmem:[%s2058_s12 + $0x28] sm:$0xff] %v920_v9  }
 0x238   : > { %v1842_v12 = vpop.eup %1841 }
 0x239   : > { %1565 = vst [vmem:[%s2058_s12 + $0x20] sm:$0xff] %v919_v11   ;;  %1712 = vmatprep.mubr.bf16.mxu1 %v919_v11 }
 0x23a   : > { %1713 = vmatmul.mubr.bf16.gmra.mxu1 %v920_v9 }
 0x23c   : > { %v1844_v13 = vpop.eup %1843 }
 0x23d   : > { %v1846_v14 = vpop.eup %1845  ;;  %v922_v15 = vpack.c.bf16 %v1844_v13, %v1842_v12 }
 0x23e   : > { %v1848_v16 = vpop.eup %1847 }
 0x23f   : > { %v921_v17 = vpack.c.bf16 %v1848_v16, %v1846_v14  ;;  %1568 = vst [vmem:[%s2058_s12 + $0x38] sm:$0xff] %v922_v15  }
 0x241   : > { %1567 = vst [vmem:[%s2058_s12 + $0x30] sm:$0xff] %v921_v17   ;;  %1716 = vmatprep.mubr.bf16.mxu1 %v921_v17 }
 0x242   : > { %1717 = vmatmul.mubr.bf16.gmra.mxu1 %v922_v15 }
 0x2ea   : > { %v1706_v18 = vpop.f32.mrf.mxu1 }
 0x2eb   : > { %1849 = vtanh.f32 %v1706_v18 }
 0x2ec   : > { %v1093_v19 = vpop.f32.mrf.mxu1 }
 0x2ee   : > { %v1707_v20 = vpop.f32.mrf.mxu1 }
 0x2ef   : > { %1851 = vtanh.f32 %v1707_v20 }
 0x2f0   : > { %1853 = vtanh.f32 %v1093_v19  ;;  %v1096_v21 = vpop.f32.mrf.mxu1 }
 0x2f1   : > { %1855 = vtanh.f32 %v1096_v21 }
 0x2f2   : > { %v1710_v22 = vpop.f32.mrf.mxu1 }
 0x2f3   : > { %1857 = vtanh.f32 %v1710_v22 }
 0x2f4   : > { %v1109_v23 = vpop.f32.mrf.mxu1 }
 0x2f6   : > { %v1711_v24 = vpop.f32.mrf.mxu1 }
 0x2f7   : > { %1859 = vtanh.f32 %v1711_v24 }
 0x2f8   : > { %1861 = vtanh.f32 %v1109_v23  ;;  %v1112_v25 = vpop.f32.mrf.mxu1  ;;  %v1850_v27 = vpop.eup %1849 }
 0x2f9   : > { %1863 = vtanh.f32 %v1112_v25 }
 0x2fa   : > { %v1714_v26 = vpop.f32.mrf.mxu1 }
 0x2fb   : > { %1865 = vtanh.f32 %v1714_v26 }
 0x2fc   : > { %v1852_v28 = vpop.eup %1851  ;;  %v1125_v29 = vpop.f32.mrf.mxu1 }
 0x2fd   : > { %v1854_v30 = vpop.eup %1853  ;;  %v1530_v31 = vpack.c.bf16 %v1852_v28, %v1850_v27 }
 0x2fe   : > { %v1856_v32 = vpop.eup %1855  ;;  %v1715_v33 = vpop.f32.mrf.mxu1 }
 0x2ff   : > { %1569 = vst [vmem:[%s2063_s15 + $0x8] sm:$0xff] %v1530_v31   ;;  %v1525_v34 = vpack.c.bf16 %v1856_v32, %v1854_v30  ;;  %1867 = vtanh.f32 %v1715_v33 }
 0x300   : > { %1869 = vtanh.f32 %v1125_v29  ;;  %v1128_v35 = vpop.f32.mrf.mxu1  ;;  %v1858_v37 = vpop.eup %1857 }
 0x301   : > { %1526 = vst [vmem:[%s2063_s15] sm:$0xff] %v1525_v34   ;;  %1871 = vtanh.f32 %v1128_v35 }
 0x302   : > { %v1718_v36 = vpop.f32.mrf.mxu1 }
 0x303   : > { %1873 = vtanh.f32 %v1718_v36 }
 0x304   : > { %v1860_v38 = vpop.eup %1859  ;;  %v1141_v39 = vpop.f32.mrf.mxu1 }
 0x305   : > { %v1862_v40 = vpop.eup %1861  ;;  %v1540_v41 = vpack.c.bf16 %v1860_v38, %v1858_v37 }
 0x306   : > { %v1864_v42 = vpop.eup %1863  ;;  %v1719_v43 = vpop.f32.mrf.mxu1 }
 0x307   : > { %1571 = vst [vmem:[%s2063_s15 + $0x18] sm:$0xff] %v1540_v41   ;;  %v1535_v44 = vpack.c.bf16 %v1864_v42, %v1862_v40  ;;  %1875 = vtanh.f32 %v1719_v43 }
 0x308   : > { %1877 = vtanh.f32 %v1141_v39  ;;  %v1144_v45 = vpop.f32.mrf.mxu1  ;;  %v1866_v46 = vpop.eup %1865 }
 0x309   : > { %1570 = vst [vmem:[%s2063_s15 + $0x10] sm:$0xff] %v1535_v44   ;;  %1879 = vtanh.f32 %v1144_v45 }
 0x30c   : > { %v1868_v47 = vpop.eup %1867 }
 0x30d   : > { %v1870_v48 = vpop.eup %1869  ;;  %v1550_v49 = vpack.c.bf16 %v1868_v47, %v1866_v46 }
 0x30e   : > { %v1872_v50 = vpop.eup %1871 }
 0x30f   : > { %1573 = vst [vmem:[%s2063_s15 + $0x28] sm:$0xff] %v1550_v49   ;;  %v1545_v51 = vpack.c.bf16 %v1872_v50, %v1870_v48 }
 0x310   : > { %v1874_v52 = vpop.eup %1873 }
 0x311   : > { %1572 = vst [vmem:[%s2063_s15 + $0x20] sm:$0xff] %v1545_v51  }
 0x314   : > { %v1876_v53 = vpop.eup %1875 }
 0x315   : > { %v1878_v54 = vpop.eup %1877  ;;  %v1560_v55 = vpack.c.bf16 %v1876_v53, %v1874_v52 }
 0x316   : > { %v1880_v56 = vpop.eup %1879 }
 0x317   : > { %1575 = vst [vmem:[%s2063_s15 + $0x38] sm:$0xff] %v1560_v55   ;;  %v1555_v57 = vpack.c.bf16 %v1880_v56, %v1878_v54 }
 0x319   : > { %1574 = vst [vmem:[%s2063_s15 + $0x30] sm:$0xff] %v1555_v57  }
 0x31a PF: > { %s17_s27 = sadd.s32 1, %s1935_s27   ;;  %s2194_s21 = smov %s1915_s22 }
 0x31b   : > { %p14_p13 = scmp.ge.s32.totalorder %s17_s27, 6   ;;  %s2195_s22 = smov %s2024_s10 }
 0x31c   : > { %s2196_s23 = smov %s1927_s25  ;;  %s2197_s24 = smov %s1931_s26 }
 0x31d   : > { %s2198_s25 = smov %s2201_s28  ;;  %s2199_s26 = smov %s2205_s29 }
 0x31e   :  { %16 = sbr.rel (!%p14_p13) target bundleno = 4 (0x4), region = 137 }

</bundles_post_ra>
